<compile_context>
chip_gen: v6e
topology: v6e:2x2x1
jax: 0.10.0
libtpu: 0.0.40
codegen_flags: <defaults>
</compile_context>

<pallas_src>
import functools
import math

import jax
import jax.numpy as jnp
from jax.experimental import pallas as pl
from jax.experimental.pallas import tpu as pltpu

D_MODEL = 128
NUM_HEADS = 8
HEAD_DIM = D_MODEL // NUM_HEADS
D_FF = 4 * D_MODEL          # module default d_ff = 4 * d_model
LN_EPS = 1e-5


def _layer_norm(x, gamma, beta):
    mean = jnp.mean(x, axis=-1, keepdims=True)
    var = jnp.mean(jnp.square(x - mean), axis=-1, keepdims=True)
    return (x - mean) * jax.lax.rsqrt(var + LN_EPS) * gamma + beta


def _encoder_kernel(mask_ref, x_ref, wqkv_ref, bqkv_ref, wo_ref, bvec_ref,
                    w1_ref, b1_ref, w2_ref, out_ref, o_scratch, *,
                    num_heads, head_dim, use_mask):
    xf = x_ref[...]                                    # (R, E) f32
    R, E = xf.shape
    xf_bf = xf.astype(jnp.bfloat16)

    # ---- fused QKV projection: one (R,E)x(E,3E) bf16 matmul, f32 acc ----
    # Layout: columns [0:E)=q (scale & bias already folded), [E:2E)=k, [2E:3E)=v
    qkv = jnp.dot(xf_bf, wqkv_ref[...],
                  preferred_element_type=jnp.float32) + bqkv_ref[...]

    # ---- per-head attention core (bf16 MXU operands, f32 softmax) ----
    for h in range(num_heads):                         # static loop over heads
        s0 = h * head_dim
        qh = qkv[:, s0:s0 + head_dim].astype(jnp.bfloat16)           # (R, hd)
        kh = qkv[:, E + s0:E + s0 + head_dim].astype(jnp.bfloat16)
        vh = qkv[:, 2 * E + s0:2 * E + s0 + head_dim].astype(jnp.bfloat16)

        scores = jax.lax.dot_general(qh, kh, (((1,), (1,)), ((), ())),
                                     preferred_element_type=jnp.float32)
        if use_mask:                                   # static flag
            scores = scores + mask_ref[...]
        scores = scores - jnp.max(scores, axis=-1, keepdims=True)
        p = jnp.exp(scores)
        p = p * pl.reciprocal(jnp.sum(p, axis=-1, keepdims=True), approx=True)
        oh = jnp.dot(p.astype(jnp.bfloat16), vh,
                     preferred_element_type=jnp.float32)             # (R, hd)
        o_scratch[:, s0:s0 + head_dim] = oh.astype(jnp.bfloat16)

    # ---- single full-K output projection ----
    attn = jnp.dot(o_scratch[...], wo_ref[...],
                   preferred_element_type=jnp.float32) + bvec_ref[0]

    # residual + LayerNorm1 (dropout == identity at inference)
    x1 = _layer_norm(xf + attn, bvec_ref[1], bvec_ref[2])

    # FFN: linear1 -> ReLU -> linear2, residual, LayerNorm2
    h1 = jnp.dot(x1.astype(jnp.bfloat16), w1_ref[...],
                 preferred_element_type=jnp.float32) + b1_ref[...]
    h1 = jnp.maximum(h1, 0.0)
    y2 = jnp.dot(h1.astype(jnp.bfloat16), w2_ref[...],
                 preferred_element_type=jnp.float32) + bvec_ref[3]

    out_ref[...] = _layer_norm(x1 + y2, bvec_ref[4],
                               bvec_ref[5]).astype(out_ref.dtype)


def _pick_batch_tile(batch, seq, max_rows=256):
    """Batch elements per grid step.

    * seq >= 64: one sequence per step (no block-diagonal waste).
    * small seq: keep R = tb*seq <= max_rows, sublane-aligned, and prefer
      >= 2 grid steps so v7x megacore can split the grid across its 2 TCs.
    """
    if seq >= 64:
        return 1 if (seq % 8 == 0 or batch == 1) else batch
    cands = []
    for tb in range(1, batch + 1):
        if batch % tb:
            continue
        rows = tb * seq
        if rows % 8 and tb != batch:          # keep sublane-aligned blocks
            continue
        if rows > max_rows and tb != batch:   # bound block-diagonal waste
            continue
        cands.append(tb)
    if not cands:
        return batch
    return max(cands, key=lambda tb: ((batch // tb) >= 2,     # >=2 grid steps
                                      tb * seq <= max_rows,   # bounded waste
                                      tb * seq))              # biggest rows


def transformer_encoder_layer(x, params, *, max_rows=256):
    """x: (B, S, E) f32.  params: math-layout weights, y = x @ W + b."""
    B, S, E = x.shape
    H, hd = NUM_HEADS, HEAD_DIM
    dff = params["w1"].shape[1]
    assert E == D_MODEL

    tb = _pick_batch_tile(B, S, max_rows)
    R = tb * S
    use_mask = tb > 1

    scale = 1.0 / math.sqrt(hd)          # 0.25 -> exact in bf16

    # ---- pack parameters: fused QKV (scale/bias folded), big weights bf16 ----
    wqkv = jnp.concatenate([params["wq"] * scale, params["wk"], params["wv"]],
                           axis=1).astype(jnp.bfloat16)            # (E, 3E)
    bqkv = jnp.concatenate([params["bq"] * scale, params["bk"], params["bv"]]
                           ).reshape(1, 3 * E).astype(jnp.float32)
    wo = params["wo"].astype(jnp.bfloat16)                         # (E, E)
    bvec = jnp.stack([params["bo"], params["ln1_g"], params["ln1_b"],
                      params["b2"], params["ln2_g"], params["ln2_b"]]
                     ).reshape(6, 1, E).astype(jnp.float32)
    w1 = params["w1"].astype(jnp.bfloat16)
    b1 = params["b1"].reshape(1, dff).astype(jnp.float32)
    w2 = params["w2"].astype(jnp.bfloat16)

    # Block-diagonal mask (rows of different sequences can't attend) computed
    # once on the host; dummy (1,1) when each grid step holds one sequence.
    if use_mask:
        rs = jnp.arange(R, dtype=jnp.int32) // S
        mask = jnp.where(rs[:, None] == rs[None, :], 0.0, -1e30
                         ).astype(jnp.float32)                     # (R, R)
    else:
        mask = jnp.zeros((1, 1), jnp.float32)

    x_flat = x.reshape(B * S, E)
    grid = ((B * S) // R,)

    def const_spec(p):
        return pl.BlockSpec(p.shape, lambda i, _nd=p.ndim: (0,) * _nd)

    kernel = functools.partial(_encoder_kernel, num_heads=H, head_dim=hd,
                               use_mask=use_mask)

    out_flat = pl.pallas_call(
        kernel,
        out_shape=jax.ShapeDtypeStruct((B * S, E), jnp.float32),
        grid=grid,
        in_specs=[const_spec(mask),
                  pl.BlockSpec((R, E), lambda i: (i, 0)),
                  const_spec(wqkv), const_spec(bqkv), const_spec(wo),
                  const_spec(bvec), const_spec(w1), const_spec(b1),
                  const_spec(w2)],
        out_specs=pl.BlockSpec((R, E), lambda i: (i, 0)),
        scratch_shapes=[pltpu.VMEM((R, E), jnp.bfloat16)],
        compiler_params=pltpu.CompilerParams(
            dimension_semantics=("parallel",)),
    )(mask, x_flat, wqkv, bqkv, wo, bvec, w1, b1, w2)

    return out_flat.reshape(B, S, E)


# ----------------------- deterministic parameters -----------------------
def make_params(key):
    def xavier(k, shape):
        fan_in, fan_out = shape
        std = math.sqrt(2.0 / (fan_in + fan_out))
        w = jax.random.normal(k, shape, jnp.float32) * std
        # round-trip through bf16 so the bf16 copies used by the kernel are
        # exactly the values the f32 reference sees
        return w.astype(jnp.bfloat16).astype(jnp.float32)

    ks = jax.random.split(key, 12)
    p = {}
    p["wq"] = xavier(ks[0], (D_MODEL, D_MODEL))
    p["wk"] = xavier(ks[1], (D_MODEL, D_MODEL))
    p["wv"] = xavier(ks[2], (D_MODEL, D_MODEL))
    p["bq"] = 0.02 * jax.random.normal(ks[3], (D_MODEL,), jnp.float32)
    p["bk"] = 0.02 * jax.random.normal(ks[4], (D_MODEL,), jnp.float32)
    p["bv"] = 0.02 * jax.random.normal(ks[5], (D_MODEL,), jnp.float32)
    p["wo"] = xavier(ks[6], (D_MODEL, D_MODEL))
    p["bo"] = 0.02 * jax.random.normal(ks[7], (D_MODEL,), jnp.float32)
    p["ln1_g"] = jnp.ones((D_MODEL,), jnp.float32)
    p["ln1_b"] = jnp.zeros((D_MODEL,), jnp.float32)
    p["w1"] = xavier(ks[8], (D_MODEL, D_FF))
    p["b1"] = 0.02 * jax.random.normal(ks[9], (D_FF,), jnp.float32)
    p["w2"] = xavier(ks[10], (D_FF, D_MODEL))
    p["b2"] = 0.02 * jax.random.normal(ks[11], (D_MODEL,), jnp.float32)
    p["ln2_g"] = jnp.ones((D_MODEL,), jnp.float32)
    p["ln2_b"] = jnp.zeros((D_MODEL,), jnp.float32)
    return p


# ------------------ pure-JAX reference (for verification) ------------------
def reference(x, p):
    B, S, E = x.shape
    H, hd = NUM_HEADS, HEAD_DIM
    q = x @ p["wq"] + p["bq"]
    k = x @ p["wk"] + p["bk"]
    v = x @ p["wv"] + p["bv"]
    qh = q.reshape(B, S, H, hd).transpose(0, 2, 1, 3)
    kh = k.reshape(B, S, H, hd).transpose(0, 2, 1, 3)
    vh = v.reshape(B, S, H, hd).transpose(0, 2, 1, 3)
    scores = (qh @ kh.transpose(0, 1, 3, 2)) / math.sqrt(hd)
    a = jax.nn.softmax(scores, axis=-1)
    o = (a @ vh).transpose(0, 2, 1, 3).reshape(B, S, E)
    o = o @ p["wo"] + p["bo"]

    def ln(t, g, b):
        m = jnp.mean(t, axis=-1, keepdims=True)
        vv = jnp.mean((t - m) ** 2, axis=-1, keepdims=True)
        return (t - m) / jnp.sqrt(vv + LN_EPS) * g + b

    x1 = ln(x + o, p["ln1_g"], p["ln1_b"])
    h = jnp.maximum(x1 @ p["w1"] + p["b1"], 0.0)
    y2 = h @ p["w2"] + p["b2"]
    return ln(x1 + y2, p["ln2_g"], p["ln2_b"])


if __name__ == "__main__":
    B, S = 2, 8
    key = jax.random.PRNGKey(0)
    kx, kp = jax.random.split(key)
    x = jax.random.normal(kx, (B, S, D_MODEL), jnp.float32)
    x = x.astype(jnp.bfloat16).astype(jnp.float32)   # bf16-representable input
    params = make_params(kp)

    out = transformer_encoder_layer(x, params)
    out = jax.block_until_ready(out)

    ref = reference(x, params)
    assert out.shape == (B, S, D_MODEL)
    err = float(jnp.max(jnp.abs(out - ref)))
    # bf16 operands on all matmuls (incl. scores / P@V) + approx reciprocal
    # vs the f32 reference
    assert err < 5e-2, f"mismatch vs reference: max abs err = {err}"
    print("KERNEL_OK")
</pallas_src>

<mosaic_0001>
module attributes {stable_mosaic.version = 11 : i64} {
  func.func @_encoder_kernel(%arg0: i32, %arg1: memref<1x1xf32, #tpu.memory_space<vmem>>, %arg2: memref<8x128xf32, #tpu.memory_space<vmem>>, %arg3: memref<128x384xbf16, #tpu.memory_space<vmem>>, %arg4: memref<1x384xf32, #tpu.memory_space<vmem>>, %arg5: memref<128x128xbf16, #tpu.memory_space<vmem>>, %arg6: memref<6x1x128xf32, #tpu.memory_space<vmem>>, %arg7: memref<128x512xbf16, #tpu.memory_space<vmem>>, %arg8: memref<1x512xf32, #tpu.memory_space<vmem>>, %arg9: memref<512x128xbf16, #tpu.memory_space<vmem>>, %arg10: memref<8x128xf32, #tpu.memory_space<vmem>>, %arg11: memref<8x128xbf16, #tpu.memory_space<vmem>>) attributes {dimension_semantics = [#tpu.dimension_semantics<parallel>], iteration_bounds = array<i64: 2>, scalar_prefetch = 0 : i64, scratch_operands = 1 : i64, tpu.core_type = #tpu.core_type<tc>, window_params = [{pipeline_mode = #tpu.pipeline_mode<synchronous>, transform_indices = @transform_0, window_bounds = array<i64: 1, 1>}, {transform_indices = @transform_1, window_bounds = array<i64: 8, 128>}, {pipeline_mode = #tpu.pipeline_mode<synchronous>, transform_indices = @transform_2, window_bounds = array<i64: 128, 384>}, {pipeline_mode = #tpu.pipeline_mode<synchronous>, transform_indices = @transform_3, window_bounds = array<i64: 1, 384>}, {pipeline_mode = #tpu.pipeline_mode<synchronous>, transform_indices = @transform_4, window_bounds = array<i64: 128, 128>}, {pipeline_mode = #tpu.pipeline_mode<synchronous>, transform_indices = @transform_5, window_bounds = array<i64: 6, 1, 128>}, {pipeline_mode = #tpu.pipeline_mode<synchronous>, transform_indices = @transform_6, window_bounds = array<i64: 128, 512>}, {pipeline_mode = #tpu.pipeline_mode<synchronous>, transform_indices = @transform_7, window_bounds = array<i64: 1, 512>}, {pipeline_mode = #tpu.pipeline_mode<synchronous>, transform_indices = @transform_8, window_bounds = array<i64: 512, 128>}, {transform_indices = @transform_9, window_bounds = array<i64: 8, 128>}]} {
    %c0 = arith.constant 0 : index
    %c0_0 = arith.constant 0 : index
    %0 = vector.load %arg2[%c0, %c0_0] : memref<8x128xf32, #tpu.memory_space<vmem>>, vector<8x128xf32>
    %1 = arith.truncf %0 : vector<8x128xf32> to vector<8x128xbf16>
    %c0_1 = arith.constant 0 : index
    %c0_2 = arith.constant 0 : index
    %2 = vector.load %arg3[%c0_1, %c0_2] : memref<128x384xbf16, #tpu.memory_space<vmem>>, vector<128x384xbf16>
    %cst = arith.constant dense<0.000000e+00> : vector<8x384xf32>
    %3 = tpu.matmul %1, %2, %cst {dimension_numbers = #tpu.dot_dimension_numbers<[1], [0], [0], [1], [0, 0, 1, 1], [], []>} : vector<8x128xbf16>, vector<128x384xbf16>, vector<8x384xf32> -> vector<8x384xf32>
    %c0_3 = arith.constant 0 : index
    %c0_4 = arith.constant 0 : index
    %4 = vector.load %arg4[%c0_3, %c0_4] : memref<1x384xf32, #tpu.memory_space<vmem>>, vector<1x384xf32>
    %5 = vector.broadcast %4 : vector<1x384xf32> to vector<8x384xf32>
    %6 = arith.addf %3, %5 : vector<8x384xf32>
    %7 = vector.extract_strided_slice %6 {offsets = [0, 0], sizes = [8, 16], strides = [1, 1]} : vector<8x384xf32> to vector<8x16xf32>
    %8 = arith.truncf %7 : vector<8x16xf32> to vector<8x16xbf16>
    %9 = vector.extract_strided_slice %6 {offsets = [0, 128], sizes = [8, 16], strides = [1, 1]} : vector<8x384xf32> to vector<8x16xf32>
    %10 = arith.truncf %9 : vector<8x16xf32> to vector<8x16xbf16>
    %11 = vector.extract_strided_slice %6 {offsets = [0, 256], sizes = [8, 16], strides = [1, 1]} : vector<8x384xf32> to vector<8x16xf32>
    %12 = arith.truncf %11 : vector<8x16xf32> to vector<8x16xbf16>
    %cst_5 = arith.constant dense<0.000000e+00> : vector<8x8xf32>
    %13 = tpu.matmul %8, %10, %cst_5 {dimension_numbers = #tpu.dot_dimension_numbers<[1], [1], [0], [0], [0, 0, 1, 0], [], []>} : vector<8x16xbf16>, vector<8x16xbf16>, vector<8x8xf32> -> vector<8x8xf32>
    %cst_6 = arith.constant dense<0xFF800000> : vector<8xf32>
    %14 = vector.multi_reduction <maximumf>, %13, %cst_6 [1] : vector<8x8xf32> to vector<8xf32>
    %15 = vector.shape_cast %14 : vector<8xf32> to vector<8x1xf32>
    %16 = vector.broadcast %15 : vector<8x1xf32> to vector<8x8xf32>
    %17 = arith.subf %13, %16 : vector<8x8xf32>
    %18 = math.exp %17 : vector<8x8xf32>
    %cst_7 = arith.constant dense<0.000000e+00> : vector<8xf32>
    %19 = vector.multi_reduction <add>, %18, %cst_7 [1] : vector<8x8xf32> to vector<8xf32>
    %20 = vector.shape_cast %19 : vector<8xf32> to vector<8x1xf32>
    %21 = tpu.reciprocal %20 {approx = true} : vector<8x1xf32> -> vector<8x1xf32>
    %22 = vector.broadcast %21 : vector<8x1xf32> to vector<8x8xf32>
    %23 = arith.mulf %18, %22 : vector<8x8xf32>
    %24 = arith.truncf %23 : vector<8x8xf32> to vector<8x8xbf16>
    %cst_8 = arith.constant dense<0.000000e+00> : vector<8x16xf32>
    %25 = tpu.matmul %24, %12, %cst_8 {dimension_numbers = #tpu.dot_dimension_numbers<[1], [0], [0], [1], [0, 0, 1, 1], [], []>} : vector<8x8xbf16>, vector<8x16xbf16>, vector<8x16xf32> -> vector<8x16xf32>
    %26 = arith.truncf %25 : vector<8x16xf32> to vector<8x16xbf16>
    %c0_9 = arith.constant 0 : index
    %c0_10 = arith.constant 0 : index
    %27 = vector.load %arg11[%c0_9, %c0_10] : memref<8x128xbf16, #tpu.memory_space<vmem>>, vector<8x16xbf16>
    tpu.vector_store %arg11[%c0_9, %c0_10], %26 {strides = array<i32>} : memref<8x128xbf16, #tpu.memory_space<vmem>>, vector<8x16xbf16>,
    %28 = vector.extract_strided_slice %6 {offsets = [0, 16], sizes = [8, 16], strides = [1, 1]} : vector<8x384xf32> to vector<8x16xf32>
    %29 = arith.truncf %28 : vector<8x16xf32> to vector<8x16xbf16>
    %30 = vector.extract_strided_slice %6 {offsets = [0, 144], sizes = [8, 16], strides = [1, 1]} : vector<8x384xf32> to vector<8x16xf32>
    %31 = arith.truncf %30 : vector<8x16xf32> to vector<8x16xbf16>
    %32 = vector.extract_strided_slice %6 {offsets = [0, 272], sizes = [8, 16], strides = [1, 1]} : vector<8x384xf32> to vector<8x16xf32>
    %33 = arith.truncf %32 : vector<8x16xf32> to vector<8x16xbf16>
    %cst_11 = arith.constant dense<0.000000e+00> : vector<8x8xf32>
    %34 = tpu.matmul %29, %31, %cst_11 {dimension_numbers = #tpu.dot_dimension_numbers<[1], [1], [0], [0], [0, 0, 1, 0], [], []>} : vector<8x16xbf16>, vector<8x16xbf16>, vector<8x8xf32> -> vector<8x8xf32>
    %cst_12 = arith.constant dense<0xFF800000> : vector<8xf32>
    %35 = vector.multi_reduction <maximumf>, %34, %cst_12 [1] : vector<8x8xf32> to vector<8xf32>
    %36 = vector.shape_cast %35 : vector<8xf32> to vector<8x1xf32>
    %37 = vector.broadcast %36 : vector<8x1xf32> to vector<8x8xf32>
    %38 = arith.subf %34, %37 : vector<8x8xf32>
    %39 = math.exp %38 : vector<8x8xf32>
    %cst_13 = arith.constant dense<0.000000e+00> : vector<8xf32>
    %40 = vector.multi_reduction <add>, %39, %cst_13 [1] : vector<8x8xf32> to vector<8xf32>
    %41 = vector.shape_cast %40 : vector<8xf32> to vector<8x1xf32>
    %42 = tpu.reciprocal %41 {approx = true} : vector<8x1xf32> -> vector<8x1xf32>
    %43 = vector.broadcast %42 : vector<8x1xf32> to vector<8x8xf32>
    %44 = arith.mulf %39, %43 : vector<8x8xf32>
    %45 = arith.truncf %44 : vector<8x8xf32> to vector<8x8xbf16>
    %cst_14 = arith.constant dense<0.000000e+00> : vector<8x16xf32>
    %46 = tpu.matmul %45, %33, %cst_14 {dimension_numbers = #tpu.dot_dimension_numbers<[1], [0], [0], [1], [0, 0, 1, 1], [], []>} : vector<8x8xbf16>, vector<8x16xbf16>, vector<8x16xf32> -> vector<8x16xf32>
    %47 = arith.truncf %46 : vector<8x16xf32> to vector<8x16xbf16>
    %c0_15 = arith.constant 0 : index
    %c16 = arith.constant 16 : index
    %48 = vector.load %arg11[%c0_15, %c16] : memref<8x128xbf16, #tpu.memory_space<vmem>>, vector<8x16xbf16>
    tpu.vector_store %arg11[%c0_15, %c16], %47 {strides = array<i32>} : memref<8x128xbf16, #tpu.memory_space<vmem>>, vector<8x16xbf16>,
    %49 = vector.extract_strided_slice %6 {offsets = [0, 32], sizes = [8, 16], strides = [1, 1]} : vector<8x384xf32> to vector<8x16xf32>
    %50 = arith.truncf %49 : vector<8x16xf32> to vector<8x16xbf16>
    %51 = vector.extract_strided_slice %6 {offsets = [0, 160], sizes = [8, 16], strides = [1, 1]} : vector<8x384xf32> to vector<8x16xf32>
    %52 = arith.truncf %51 : vector<8x16xf32> to vector<8x16xbf16>
    %53 = vector.extract_strided_slice %6 {offsets = [0, 288], sizes = [8, 16], strides = [1, 1]} : vector<8x384xf32> to vector<8x16xf32>
    %54 = arith.truncf %53 : vector<8x16xf32> to vector<8x16xbf16>
    %cst_16 = arith.constant dense<0.000000e+00> : vector<8x8xf32>
    %55 = tpu.matmul %50, %52, %cst_16 {dimension_numbers = #tpu.dot_dimension_numbers<[1], [1], [0], [0], [0, 0, 1, 0], [], []>} : vector<8x16xbf16>, vector<8x16xbf16>, vector<8x8xf32> -> vector<8x8xf32>
    %cst_17 = arith.constant dense<0xFF800000> : vector<8xf32>
    %56 = vector.multi_reduction <maximumf>, %55, %cst_17 [1] : vector<8x8xf32> to vector<8xf32>
    %57 = vector.shape_cast %56 : vector<8xf32> to vector<8x1xf32>
    %58 = vector.broadcast %57 : vector<8x1xf32> to vector<8x8xf32>
    %59 = arith.subf %55, %58 : vector<8x8xf32>
    %60 = math.exp %59 : vector<8x8xf32>
    %cst_18 = arith.constant dense<0.000000e+00> : vector<8xf32>
    %61 = vector.multi_reduction <add>, %60, %cst_18 [1] : vector<8x8xf32> to vector<8xf32>
    %62 = vector.shape_cast %61 : vector<8xf32> to vector<8x1xf32>
    %63 = tpu.reciprocal %62 {approx = true} : vector<8x1xf32> -> vector<8x1xf32>
    %64 = vector.broadcast %63 : vector<8x1xf32> to vector<8x8xf32>
    %65 = arith.mulf %60, %64 : vector<8x8xf32>
    %66 = arith.truncf %65 : vector<8x8xf32> to vector<8x8xbf16>
    %cst_19 = arith.constant dense<0.000000e+00> : vector<8x16xf32>
    %67 = tpu.matmul %66, %54, %cst_19 {dimension_numbers = #tpu.dot_dimension_numbers<[1], [0], [0], [1], [0, 0, 1, 1], [], []>} : vector<8x8xbf16>, vector<8x16xbf16>, vector<8x16xf32> -> vector<8x16xf32>
    %68 = arith.truncf %67 : vector<8x16xf32> to vector<8x16xbf16>
    %c0_20 = arith.constant 0 : index
    %c32 = arith.constant 32 : index
    %69 = vector.load %arg11[%c0_20, %c32] : memref<8x128xbf16, #tpu.memory_space<vmem>>, vector<8x16xbf16>
    tpu.vector_store %arg11[%c0_20, %c32], %68 {strides = array<i32>} : memref<8x128xbf16, #tpu.memory_space<vmem>>, vector<8x16xbf16>,
    %70 = vector.extract_strided_slice %6 {offsets = [0, 48], sizes = [8, 16], strides = [1, 1]} : vector<8x384xf32> to vector<8x16xf32>
    %71 = arith.truncf %70 : vector<8x16xf32> to vector<8x16xbf16>
    %72 = vector.extract_strided_slice %6 {offsets = [0, 176], sizes = [8, 16], strides = [1, 1]} : vector<8x384xf32> to vector<8x16xf32>
    %73 = arith.truncf %72 : vector<8x16xf32> to vector<8x16xbf16>
    %74 = vector.extract_strided_slice %6 {offsets = [0, 304], sizes = [8, 16], strides = [1, 1]} : vector<8x384xf32> to vector<8x16xf32>
    %75 = arith.truncf %74 : vector<8x16xf32> to vector<8x16xbf16>
    %cst_21 = arith.constant dense<0.000000e+00> : vector<8x8xf32>
    %76 = tpu.matmul %71, %73, %cst_21 {dimension_numbers = #tpu.dot_dimension_numbers<[1], [1], [0], [0], [0, 0, 1, 0], [], []>} : vector<8x16xbf16>, vector<8x16xbf16>, vector<8x8xf32> -> vector<8x8xf32>
    %cst_22 = arith.constant dense<0xFF800000> : vector<8xf32>
    %77 = vector.multi_reduction <maximumf>, %76, %cst_22 [1] : vector<8x8xf32> to vector<8xf32>
    %78 = vector.shape_cast %77 : vector<8xf32> to vector<8x1xf32>
    %79 = vector.broadcast %78 : vector<8x1xf32> to vector<8x8xf32>
    %80 = arith.subf %76, %79 : vector<8x8xf32>
    %81 = math.exp %80 : vector<8x8xf32>
    %cst_23 = arith.constant dense<0.000000e+00> : vector<8xf32>
    %82 = vector.multi_reduction <add>, %81, %cst_23 [1] : vector<8x8xf32> to vector<8xf32>
    %83 = vector.shape_cast %82 : vector<8xf32> to vector<8x1xf32>
    %84 = tpu.reciprocal %83 {approx = true} : vector<8x1xf32> -> vector<8x1xf32>
    %85 = vector.broadcast %84 : vector<8x1xf32> to vector<8x8xf32>
    %86 = arith.mulf %81, %85 : vector<8x8xf32>
    %87 = arith.truncf %86 : vector<8x8xf32> to vector<8x8xbf16>
    %cst_24 = arith.constant dense<0.000000e+00> : vector<8x16xf32>
    %88 = tpu.matmul %87, %75, %cst_24 {dimension_numbers = #tpu.dot_dimension_numbers<[1], [0], [0], [1], [0, 0, 1, 1], [], []>} : vector<8x8xbf16>, vector<8x16xbf16>, vector<8x16xf32> -> vector<8x16xf32>
    %89 = arith.truncf %88 : vector<8x16xf32> to vector<8x16xbf16>
    %c0_25 = arith.constant 0 : index
    %c48 = arith.constant 48 : index
    %90 = vector.load %arg11[%c0_25, %c48] : memref<8x128xbf16, #tpu.memory_space<vmem>>, vector<8x16xbf16>
    tpu.vector_store %arg11[%c0_25, %c48], %89 {strides = array<i32>} : memref<8x128xbf16, #tpu.memory_space<vmem>>, vector<8x16xbf16>,
    %91 = vector.extract_strided_slice %6 {offsets = [0, 64], sizes = [8, 16], strides = [1, 1]} : vector<8x384xf32> to vector<8x16xf32>
    %92 = arith.truncf %91 : vector<8x16xf32> to vector<8x16xbf16>
    %93 = vector.extract_strided_slice %6 {offsets = [0, 192], sizes = [8, 16], strides = [1, 1]} : vector<8x384xf32> to vector<8x16xf32>
    %94 = arith.truncf %93 : vector<8x16xf32> to vector<8x16xbf16>
    %95 = vector.extract_strided_slice %6 {offsets = [0, 320], sizes = [8, 16], strides = [1, 1]} : vector<8x384xf32> to vector<8x16xf32>
    %96 = arith.truncf %95 : vector<8x16xf32> to vector<8x16xbf16>
    %cst_26 = arith.constant dense<0.000000e+00> : vector<8x8xf32>
    %97 = tpu.matmul %92, %94, %cst_26 {dimension_numbers = #tpu.dot_dimension_numbers<[1], [1], [0], [0], [0, 0, 1, 0], [], []>} : vector<8x16xbf16>, vector<8x16xbf16>, vector<8x8xf32> -> vector<8x8xf32>
    %cst_27 = arith.constant dense<0xFF800000> : vector<8xf32>
    %98 = vector.multi_reduction <maximumf>, %97, %cst_27 [1] : vector<8x8xf32> to vector<8xf32>
    %99 = vector.shape_cast %98 : vector<8xf32> to vector<8x1xf32>
    %100 = vector.broadcast %99 : vector<8x1xf32> to vector<8x8xf32>
    %101 = arith.subf %97, %100 : vector<8x8xf32>
    %102 = math.exp %101 : vector<8x8xf32>
    %cst_28 = arith.constant dense<0.000000e+00> : vector<8xf32>
    %103 = vector.multi_reduction <add>, %102, %cst_28 [1] : vector<8x8xf32> to vector<8xf32>
    %104 = vector.shape_cast %103 : vector<8xf32> to vector<8x1xf32>
    %105 = tpu.reciprocal %104 {approx = true} : vector<8x1xf32> -> vector<8x1xf32>
    %106 = vector.broadcast %105 : vector<8x1xf32> to vector<8x8xf32>
    %107 = arith.mulf %102, %106 : vector<8x8xf32>
    %108 = arith.truncf %107 : vector<8x8xf32> to vector<8x8xbf16>
    %cst_29 = arith.constant dense<0.000000e+00> : vector<8x16xf32>
    %109 = tpu.matmul %108, %96, %cst_29 {dimension_numbers = #tpu.dot_dimension_numbers<[1], [0], [0], [1], [0, 0, 1, 1], [], []>} : vector<8x8xbf16>, vector<8x16xbf16>, vector<8x16xf32> -> vector<8x16xf32>
    %110 = arith.truncf %109 : vector<8x16xf32> to vector<8x16xbf16>
    %c0_30 = arith.constant 0 : index
    %c64 = arith.constant 64 : index
    %111 = vector.load %arg11[%c0_30, %c64] : memref<8x128xbf16, #tpu.memory_space<vmem>>, vector<8x16xbf16>
    tpu.vector_store %arg11[%c0_30, %c64], %110 {strides = array<i32>} : memref<8x128xbf16, #tpu.memory_space<vmem>>, vector<8x16xbf16>,
    %112 = vector.extract_strided_slice %6 {offsets = [0, 80], sizes = [8, 16], strides = [1, 1]} : vector<8x384xf32> to vector<8x16xf32>
    %113 = arith.truncf %112 : vector<8x16xf32> to vector<8x16xbf16>
    %114 = vector.extract_strided_slice %6 {offsets = [0, 208], sizes = [8, 16], strides = [1, 1]} : vector<8x384xf32> to vector<8x16xf32>
    %115 = arith.truncf %114 : vector<8x16xf32> to vector<8x16xbf16>
    %116 = vector.extract_strided_slice %6 {offsets = [0, 336], sizes = [8, 16], strides = [1, 1]} : vector<8x384xf32> to vector<8x16xf32>
    %117 = arith.truncf %116 : vector<8x16xf32> to vector<8x16xbf16>
    %cst_31 = arith.constant dense<0.000000e+00> : vector<8x8xf32>
    %118 = tpu.matmul %113, %115, %cst_31 {dimension_numbers = #tpu.dot_dimension_numbers<[1], [1], [0], [0], [0, 0, 1, 0], [], []>} : vector<8x16xbf16>, vector<8x16xbf16>, vector<8x8xf32> -> vector<8x8xf32>
    %cst_32 = arith.constant dense<0xFF800000> : vector<8xf32>
    %119 = vector.multi_reduction <maximumf>, %118, %cst_32 [1] : vector<8x8xf32> to vector<8xf32>
    %120 = vector.shape_cast %119 : vector<8xf32> to vector<8x1xf32>
    %121 = vector.broadcast %120 : vector<8x1xf32> to vector<8x8xf32>
    %122 = arith.subf %118, %121 : vector<8x8xf32>
    %123 = math.exp %122 : vector<8x8xf32>
    %cst_33 = arith.constant dense<0.000000e+00> : vector<8xf32>
    %124 = vector.multi_reduction <add>, %123, %cst_33 [1] : vector<8x8xf32> to vector<8xf32>
    %125 = vector.shape_cast %124 : vector<8xf32> to vector<8x1xf32>
    %126 = tpu.reciprocal %125 {approx = true} : vector<8x1xf32> -> vector<8x1xf32>
    %127 = vector.broadcast %126 : vector<8x1xf32> to vector<8x8xf32>
    %128 = arith.mulf %123, %127 : vector<8x8xf32>
    %129 = arith.truncf %128 : vector<8x8xf32> to vector<8x8xbf16>
    %cst_34 = arith.constant dense<0.000000e+00> : vector<8x16xf32>
    %130 = tpu.matmul %129, %117, %cst_34 {dimension_numbers = #tpu.dot_dimension_numbers<[1], [0], [0], [1], [0, 0, 1, 1], [], []>} : vector<8x8xbf16>, vector<8x16xbf16>, vector<8x16xf32> -> vector<8x16xf32>
    %131 = arith.truncf %130 : vector<8x16xf32> to vector<8x16xbf16>
    %c0_35 = arith.constant 0 : index
    %c80 = arith.constant 80 : index
    %132 = vector.load %arg11[%c0_35, %c80] : memref<8x128xbf16, #tpu.memory_space<vmem>>, vector<8x16xbf16>
    tpu.vector_store %arg11[%c0_35, %c80], %131 {strides = array<i32>} : memref<8x128xbf16, #tpu.memory_space<vmem>>, vector<8x16xbf16>,
    %133 = vector.extract_strided_slice %6 {offsets = [0, 96], sizes = [8, 16], strides = [1, 1]} : vector<8x384xf32> to vector<8x16xf32>
    %134 = arith.truncf %133 : vector<8x16xf32> to vector<8x16xbf16>
    %135 = vector.extract_strided_slice %6 {offsets = [0, 224], sizes = [8, 16], strides = [1, 1]} : vector<8x384xf32> to vector<8x16xf32>
    %136 = arith.truncf %135 : vector<8x16xf32> to vector<8x16xbf16>
    %137 = vector.extract_strided_slice %6 {offsets = [0, 352], sizes = [8, 16], strides = [1, 1]} : vector<8x384xf32> to vector<8x16xf32>
    %138 = arith.truncf %137 : vector<8x16xf32> to vector<8x16xbf16>
    %cst_36 = arith.constant dense<0.000000e+00> : vector<8x8xf32>
    %139 = tpu.matmul %134, %136, %cst_36 {dimension_numbers = #tpu.dot_dimension_numbers<[1], [1], [0], [0], [0, 0, 1, 0], [], []>} : vector<8x16xbf16>, vector<8x16xbf16>, vector<8x8xf32> -> vector<8x8xf32>
    %cst_37 = arith.constant dense<0xFF800000> : vector<8xf32>
    %140 = vector.multi_reduction <maximumf>, %139, %cst_37 [1] : vector<8x8xf32> to vector<8xf32>
    %141 = vector.shape_cast %140 : vector<8xf32> to vector<8x1xf32>
    %142 = vector.broadcast %141 : vector<8x1xf32> to vector<8x8xf32>
    %143 = arith.subf %139, %142 : vector<8x8xf32>
    %144 = math.exp %143 : vector<8x8xf32>
    %cst_38 = arith.constant dense<0.000000e+00> : vector<8xf32>
    %145 = vector.multi_reduction <add>, %144, %cst_38 [1] : vector<8x8xf32> to vector<8xf32>
    %146 = vector.shape_cast %145 : vector<8xf32> to vector<8x1xf32>
    %147 = tpu.reciprocal %146 {approx = true} : vector<8x1xf32> -> vector<8x1xf32>
    %148 = vector.broadcast %147 : vector<8x1xf32> to vector<8x8xf32>
    %149 = arith.mulf %144, %148 : vector<8x8xf32>
    %150 = arith.truncf %149 : vector<8x8xf32> to vector<8x8xbf16>
    %cst_39 = arith.constant dense<0.000000e+00> : vector<8x16xf32>
    %151 = tpu.matmul %150, %138, %cst_39 {dimension_numbers = #tpu.dot_dimension_numbers<[1], [0], [0], [1], [0, 0, 1, 1], [], []>} : vector<8x8xbf16>, vector<8x16xbf16>, vector<8x16xf32> -> vector<8x16xf32>
    %152 = arith.truncf %151 : vector<8x16xf32> to vector<8x16xbf16>
    %c0_40 = arith.constant 0 : index
    %c96 = arith.constant 96 : index
    %153 = vector.load %arg11[%c0_40, %c96] : memref<8x128xbf16, #tpu.memory_space<vmem>>, vector<8x16xbf16>
    tpu.vector_store %arg11[%c0_40, %c96], %152 {strides = array<i32>} : memref<8x128xbf16, #tpu.memory_space<vmem>>, vector<8x16xbf16>,
    %154 = vector.extract_strided_slice %6 {offsets = [0, 112], sizes = [8, 16], strides = [1, 1]} : vector<8x384xf32> to vector<8x16xf32>
    %155 = arith.truncf %154 : vector<8x16xf32> to vector<8x16xbf16>
    %156 = vector.extract_strided_slice %6 {offsets = [0, 240], sizes = [8, 16], strides = [1, 1]} : vector<8x384xf32> to vector<8x16xf32>
    %157 = arith.truncf %156 : vector<8x16xf32> to vector<8x16xbf16>
    %158 = vector.extract_strided_slice %6 {offsets = [0, 368], sizes = [8, 16], strides = [1, 1]} : vector<8x384xf32> to vector<8x16xf32>
    %159 = arith.truncf %158 : vector<8x16xf32> to vector<8x16xbf16>
    %cst_41 = arith.constant dense<0.000000e+00> : vector<8x8xf32>
    %160 = tpu.matmul %155, %157, %cst_41 {dimension_numbers = #tpu.dot_dimension_numbers<[1], [1], [0], [0], [0, 0, 1, 0], [], []>} : vector<8x16xbf16>, vector<8x16xbf16>, vector<8x8xf32> -> vector<8x8xf32>
    %cst_42 = arith.constant dense<0xFF800000> : vector<8xf32>
    %161 = vector.multi_reduction <maximumf>, %160, %cst_42 [1] : vector<8x8xf32> to vector<8xf32>
    %162 = vector.shape_cast %161 : vector<8xf32> to vector<8x1xf32>
    %163 = vector.broadcast %162 : vector<8x1xf32> to vector<8x8xf32>
    %164 = arith.subf %160, %163 : vector<8x8xf32>
    %165 = math.exp %164 : vector<8x8xf32>
    %cst_43 = arith.constant dense<0.000000e+00> : vector<8xf32>
    %166 = vector.multi_reduction <add>, %165, %cst_43 [1] : vector<8x8xf32> to vector<8xf32>
    %167 = vector.shape_cast %166 : vector<8xf32> to vector<8x1xf32>
    %168 = tpu.reciprocal %167 {approx = true} : vector<8x1xf32> -> vector<8x1xf32>
    %169 = vector.broadcast %168 : vector<8x1xf32> to vector<8x8xf32>
    %170 = arith.mulf %165, %169 : vector<8x8xf32>
    %171 = arith.truncf %170 : vector<8x8xf32> to vector<8x8xbf16>
    %cst_44 = arith.constant dense<0.000000e+00> : vector<8x16xf32>
    %172 = tpu.matmul %171, %159, %cst_44 {dimension_numbers = #tpu.dot_dimension_numbers<[1], [0], [0], [1], [0, 0, 1, 1], [], []>} : vector<8x8xbf16>, vector<8x16xbf16>, vector<8x16xf32> -> vector<8x16xf32>
    %173 = arith.truncf %172 : vector<8x16xf32> to vector<8x16xbf16>
    %c0_45 = arith.constant 0 : index
    %c112 = arith.constant 112 : index
    %174 = vector.load %arg11[%c0_45, %c112] : memref<8x128xbf16, #tpu.memory_space<vmem>>, vector<8x16xbf16>
    tpu.vector_store %arg11[%c0_45, %c112], %173 {strides = array<i32>} : memref<8x128xbf16, #tpu.memory_space<vmem>>, vector<8x16xbf16>,
    %c0_46 = arith.constant 0 : index
    %c0_47 = arith.constant 0 : index
    %175 = vector.load %arg11[%c0_46, %c0_47] : memref<8x128xbf16, #tpu.memory_space<vmem>>, vector<8x128xbf16>
    %c0_48 = arith.constant 0 : index
    %c0_49 = arith.constant 0 : index
    %176 = vector.load %arg5[%c0_48, %c0_49] : memref<128x128xbf16, #tpu.memory_space<vmem>>, vector<128x128xbf16>
    %cst_50 = arith.constant dense<0.000000e+00> : vector<8x128xf32>
    %177 = tpu.matmul %175, %176, %cst_50 {dimension_numbers = #tpu.dot_dimension_numbers<[1], [0], [0], [1], [0, 0, 1, 1], [], []>} : vector<8x128xbf16>, vector<128x128xbf16>, vector<8x128xf32> -> vector<8x128xf32>
    %c0_51 = arith.constant 0 : index
    %c0_52 = arith.constant 0 : index
    %c0_53 = arith.constant 0 : index
    %178 = vector.load %arg6[%c0_51, %c0_52, %c0_53] : memref<6x1x128xf32, #tpu.memory_space<vmem>>, vector<1x1x128xf32>
    %179 = vector.shape_cast %178 : vector<1x1x128xf32> to vector<1x128xf32>
    %180 = vector.broadcast %179 : vector<1x128xf32> to vector<8x128xf32>
    %181 = arith.addf %177, %180 : vector<8x128xf32>
    %182 = arith.addf %0, %181 : vector<8x128xf32>
    %c1 = arith.constant 1 : index
    %c0_54 = arith.constant 0 : index
    %c0_55 = arith.constant 0 : index
    %183 = vector.load %arg6[%c1, %c0_54, %c0_55] : memref<6x1x128xf32, #tpu.memory_space<vmem>>, vector<1x1x128xf32>
    %184 = vector.shape_cast %183 : vector<1x1x128xf32> to vector<1x128xf32>
    %c2 = arith.constant 2 : index
    %c0_56 = arith.constant 0 : index
    %c0_57 = arith.constant 0 : index
    %185 = vector.load %arg6[%c2, %c0_56, %c0_57] : memref<6x1x128xf32, #tpu.memory_space<vmem>>, vector<1x1x128xf32>
    %186 = vector.shape_cast %185 : vector<1x1x128xf32> to vector<1x128xf32>
    %cst_58 = arith.constant dense<0.000000e+00> : vector<8xf32>
    %187 = vector.multi_reduction <add>, %182, %cst_58 [1] : vector<8x128xf32> to vector<8xf32>
    %188 = vector.shape_cast %187 : vector<8xf32> to vector<8x1xf32>
    %cst_59 = arith.constant 1.280000e+02 : f32
    %189 = vector.broadcast %cst_59 : f32 to vector<8x1xf32>
    %190 = arith.divf %188, %189 : vector<8x1xf32>
    %191 = vector.broadcast %190 : vector<8x1xf32> to vector<8x128xf32>
    %192 = arith.subf %182, %191 : vector<8x128xf32>
    %193 = arith.mulf %192, %192 : vector<8x128xf32>
    %cst_60 = arith.constant dense<0.000000e+00> : vector<8xf32>
    %194 = vector.multi_reduction <add>, %193, %cst_60 [1] : vector<8x128xf32> to vector<8xf32>
    %195 = vector.shape_cast %194 : vector<8xf32> to vector<8x1xf32>
    %cst_61 = arith.constant 1.280000e+02 : f32
    %196 = vector.broadcast %cst_61 : f32 to vector<8x1xf32>
    %197 = arith.divf %195, %196 : vector<8x1xf32>
    %198 = vector.broadcast %190 : vector<8x1xf32> to vector<8x128xf32>
    %199 = arith.subf %182, %198 : vector<8x128xf32>
    %cst_62 = arith.constant 9.99999974E-6 : f32
    %200 = vector.broadcast %cst_62 : f32 to vector<8x1xf32>
    %201 = arith.addf %197, %200 : vector<8x1xf32>
    %202 = math.rsqrt %201 : vector<8x1xf32>
    %203 = vector.broadcast %202 : vector<8x1xf32> to vector<8x128xf32>
    %204 = arith.mulf %199, %203 : vector<8x128xf32>
    %205 = vector.broadcast %184 : vector<1x128xf32> to vector<8x128xf32>
    %206 = arith.mulf %204, %205 : vector<8x128xf32>
    %207 = vector.broadcast %186 : vector<1x128xf32> to vector<8x128xf32>
    %208 = arith.addf %206, %207 : vector<8x128xf32>
    %209 = arith.truncf %208 : vector<8x128xf32> to vector<8x128xbf16>
    %c0_63 = arith.constant 0 : index
    %c0_64 = arith.constant 0 : index
    %210 = vector.load %arg7[%c0_63, %c0_64] : memref<128x512xbf16, #tpu.memory_space<vmem>>, vector<128x512xbf16>
    %cst_65 = arith.constant dense<0.000000e+00> : vector<8x512xf32>
    %211 = tpu.matmul %209, %210, %cst_65 {dimension_numbers = #tpu.dot_dimension_numbers<[1], [0], [0], [1], [0, 0, 1, 1], [], []>} : vector<8x128xbf16>, vector<128x512xbf16>, vector<8x512xf32> -> vector<8x512xf32>
    %c0_66 = arith.constant 0 : index
    %c0_67 = arith.constant 0 : index
    %212 = vector.load %arg8[%c0_66, %c0_67] : memref<1x512xf32, #tpu.memory_space<vmem>>, vector<1x512xf32>
    %213 = vector.broadcast %212 : vector<1x512xf32> to vector<8x512xf32>
    %214 = arith.addf %211, %213 : vector<8x512xf32>
    %cst_68 = arith.constant 0.000000e+00 : f32
    %215 = vector.broadcast %cst_68 : f32 to vector<8x512xf32>
    %216 = arith.maximumf %214, %215 : vector<8x512xf32>
    %217 = arith.truncf %216 : vector<8x512xf32> to vector<8x512xbf16>
    %c0_69 = arith.constant 0 : index
    %c0_70 = arith.constant 0 : index
    %218 = vector.load %arg9[%c0_69, %c0_70] : memref<512x128xbf16, #tpu.memory_space<vmem>>, vector<512x128xbf16>
    %cst_71 = arith.constant dense<0.000000e+00> : vector<8x128xf32>
    %219 = tpu.matmul %217, %218, %cst_71 {dimension_numbers = #tpu.dot_dimension_numbers<[1], [0], [0], [1], [0, 0, 1, 1], [], []>} : vector<8x512xbf16>, vector<512x128xbf16>, vector<8x128xf32> -> vector<8x128xf32>
    %c3 = arith.constant 3 : index
    %c0_72 = arith.constant 0 : index
    %c0_73 = arith.constant 0 : index
    %220 = vector.load %arg6[%c3, %c0_72, %c0_73] : memref<6x1x128xf32, #tpu.memory_space<vmem>>, vector<1x1x128xf32>
    %221 = vector.shape_cast %220 : vector<1x1x128xf32> to vector<1x128xf32>
    %222 = vector.broadcast %221 : vector<1x128xf32> to vector<8x128xf32>
    %223 = arith.addf %219, %222 : vector<8x128xf32>
    %224 = arith.addf %208, %223 : vector<8x128xf32>
    %c4 = arith.constant 4 : index
    %c0_74 = arith.constant 0 : index
    %c0_75 = arith.constant 0 : index
    %225 = vector.load %arg6[%c4, %c0_74, %c0_75] : memref<6x1x128xf32, #tpu.memory_space<vmem>>, vector<1x1x128xf32>
    %226 = vector.shape_cast %225 : vector<1x1x128xf32> to vector<1x128xf32>
    %c5 = arith.constant 5 : index
    %c0_76 = arith.constant 0 : index
    %c0_77 = arith.constant 0 : index
    %227 = vector.load %arg6[%c5, %c0_76, %c0_77] : memref<6x1x128xf32, #tpu.memory_space<vmem>>, vector<1x1x128xf32>
    %228 = vector.shape_cast %227 : vector<1x1x128xf32> to vector<1x128xf32>
    %cst_78 = arith.constant dense<0.000000e+00> : vector<8xf32>
    %229 = vector.multi_reduction <add>, %224, %cst_78 [1] : vector<8x128xf32> to vector<8xf32>
    %230 = vector.shape_cast %229 : vector<8xf32> to vector<8x1xf32>
    %cst_79 = arith.constant 1.280000e+02 : f32
    %231 = vector.broadcast %cst_79 : f32 to vector<8x1xf32>
    %232 = arith.divf %230, %231 : vector<8x1xf32>
    %233 = vector.broadcast %232 : vector<8x1xf32> to vector<8x128xf32>
    %234 = arith.subf %224, %233 : vector<8x128xf32>
    %235 = arith.mulf %234, %234 : vector<8x128xf32>
    %cst_80 = arith.constant dense<0.000000e+00> : vector<8xf32>
    %236 = vector.multi_reduction <add>, %235, %cst_80 [1] : vector<8x128xf32> to vector<8xf32>
    %237 = vector.shape_cast %236 : vector<8xf32> to vector<8x1xf32>
    %cst_81 = arith.constant 1.280000e+02 : f32
    %238 = vector.broadcast %cst_81 : f32 to vector<8x1xf32>
    %239 = arith.divf %237, %238 : vector<8x1xf32>
    %240 = vector.broadcast %232 : vector<8x1xf32> to vector<8x128xf32>
    %241 = arith.subf %224, %240 : vector<8x128xf32>
    %cst_82 = arith.constant 9.99999974E-6 : f32
    %242 = vector.broadcast %cst_82 : f32 to vector<8x1xf32>
    %243 = arith.addf %239, %242 : vector<8x1xf32>
    %244 = math.rsqrt %243 : vector<8x1xf32>
    %245 = vector.broadcast %244 : vector<8x1xf32> to vector<8x128xf32>
    %246 = arith.mulf %241, %245 : vector<8x128xf32>
    %247 = vector.broadcast %226 : vector<1x128xf32> to vector<8x128xf32>
    %248 = arith.mulf %246, %247 : vector<8x128xf32>
    %249 = vector.broadcast %228 : vector<1x128xf32> to vector<8x128xf32>
    %250 = arith.addf %248, %249 : vector<8x128xf32>
    %c0_83 = arith.constant 0 : index
    %c0_84 = arith.constant 0 : index
    %251 = vector.load %arg10[%c0_83, %c0_84] : memref<8x128xf32, #tpu.memory_space<vmem>>, vector<8x128xf32>
    tpu.vector_store %arg10[%c0_83, %c0_84], %250 {strides = array<i32>} : memref<8x128xf32, #tpu.memory_space<vmem>>, vector<8x128xf32>,
    return
  }
  func.func @transform_0(%arg0: i32) -> (i32, i32) {
    %c0_i32 = arith.constant 0 : i32
    %c0_i32_0 = arith.constant 0 : i32
    %c0_i32_1 = arith.constant 0 : i32
    return %c0_i32, %c0_i32_0 : i32, i32
  }
  func.func @transform_1(%arg0: i32) -> (i32, i32) {
    %c0_i32 = arith.constant 0 : i32
    %c0_i32_0 = arith.constant 0 : i32
    return %arg0, %c0_i32 : i32, i32
  }
  func.func @transform_2(%arg0: i32) -> (i32, i32) {
    %c0_i32 = arith.constant 0 : i32
    %c0_i32_0 = arith.constant 0 : i32
    %c0_i32_1 = arith.constant 0 : i32
    return %c0_i32, %c0_i32_0 : i32, i32
  }
  func.func @transform_3(%arg0: i32) -> (i32, i32) {
    %c0_i32 = arith.constant 0 : i32
    %c0_i32_0 = arith.constant 0 : i32
    %c0_i32_1 = arith.constant 0 : i32
    return %c0_i32, %c0_i32_0 : i32, i32
  }
  func.func @transform_4(%arg0: i32) -> (i32, i32) {
    %c0_i32 = arith.constant 0 : i32
    %c0_i32_0 = arith.constant 0 : i32
    %c0_i32_1 = arith.constant 0 : i32
    return %c0_i32, %c0_i32_0 : i32, i32
  }
  func.func @transform_5(%arg0: i32) -> (i32, i32, i32) {
    %c0_i32 = arith.constant 0 : i32
    %c0_i32_0 = arith.constant 0 : i32
    %c0_i32_1 = arith.constant 0 : i32
    %c0_i32_2 = arith.constant 0 : i32
    return %c0_i32, %c0_i32_0, %c0_i32_1 : i32, i32, i32
  }
  func.func @transform_6(%arg0: i32) -> (i32, i32) {
    %c0_i32 = arith.constant 0 : i32
    %c0_i32_0 = arith.constant 0 : i32
    %c0_i32_1 = arith.constant 0 : i32
    return %c0_i32, %c0_i32_0 : i32, i32
  }
  func.func @transform_7(%arg0: i32) -> (i32, i32) {
    %c0_i32 = arith.constant 0 : i32
    %c0_i32_0 = arith.constant 0 : i32
    %c0_i32_1 = arith.constant 0 : i32
    return %c0_i32, %c0_i32_0 : i32, i32
  }
  func.func @transform_8(%arg0: i32) -> (i32, i32) {
    %c0_i32 = arith.constant 0 : i32
    %c0_i32_0 = arith.constant 0 : i32
    %c0_i32_1 = arith.constant 0 : i32
    return %c0_i32, %c0_i32_0 : i32, i32
  }
  func.func @transform_9(%arg0: i32) -> (i32, i32) {
    %c0_i32 = arith.constant 0 : i32
    %c0_i32_0 = arith.constant 0 : i32
    return %arg0, %c0_i32 : i32, i32
  }
}

</mosaic_0001>

<bundles_post_ra>
// kernel: tpu_custom_call.1
= control target key start
LH: loop header
LB: loop body
LE: loop exit
PB: predicated region body
PF: predicated region fallthrough
CT: control target
= control target key end

     0   :  { %s3997_s0 = inlined_call_operand.<no memory space> [shape: f32[1,1], index: 0, kind: input, shape index: {}]   ;;  %s3998_s1 = inlined_call_operand.hbm [shape: f32[16,128], index: 1, kind: input, shape index: {}]   ;;  %s3999_s2 = inlined_call_operand.hbm [shape: bf16[128,384], index: 2, kind: input, shape index: {}]   ;;  %s4000_s3 = inlined_call_operand.hbm [shape: f32[1,384], index: 3, kind: input, shape index: {}]   ;;  %s4001_s4 = inlined_call_operand.hbm [shape: bf16[128,128], index: 4, kind: input, shape index: {}]   ;;  %s4002_s5 = inlined_call_operand.vmem [shape: f32[6,1,128], index: 5, kind: input, shape index: {}]   ;;  %s4003_s6 = inlined_call_operand.hbm [shape: bf16[128,512], index: 6, kind: input, shape index: {}]   ;;  %s4004_s7 = inlined_call_operand.vmem [shape: f32[1,512], index: 7, kind: input, shape index: {}]   ;;  %s4005_s8 = inlined_call_operand.hbm [shape: bf16[512,128], index: 8, kind: input, shape index: {}]   ;;  %s4006_s9 = inlined_call_operand.hbm [shape: f32[16,128], index: 9, kind: output, shape index: {}]  }
   0x1   :  { %4011 = sst [smem:[#allocation21_spill]] %s3999_s2 }
   0x2   :  { %4012 = sst [smem:[#allocation22_spill]] %s4000_s3 }
   0x3   :  { %4013 = sst [smem:[#allocation23_spill]] %s4001_s4 }
   0x4   :  { %16 = vsyncpa [#allocation5], 0 }
   0x5   :  { %18 = vsyncpa [#allocation5 + $0x1], 0 }
   0x6   :  { %19 = vsyncpa [#allocation8], 0 }
   0x7   :  { %20 = vsyncpa [#allocation11], 0 }
   0x8   :  { %21 = vsyncpa [#allocation14], 0 }
   0x9   :  { %22 = vsyncpa [#allocation6], 0 }
   0xa   :  { %24 = vsyncpa [#allocation6 + $0x1], 0  ;;  %s3554_s29 = smov 0   ;;  %s3556_s30 = smov 0  }
   0xb   :  { %s3558_s10 = smov 0   ;;  %s3560_s11 = smov 0  }
   0xc LB: > { %s3481_s12 = smov [#allocation7]   ;;  %s3575_s14 = sadd.s32 4294967295, %s3479_s11   ;;  %s3479_s11 = sphi %s3560_s11, %s4038_s11   ;;  %s3475_s10 = sphi %s3558_s10, %s4037_s10   ;;  %s3471_s30 = sphi %s3556_s30, %s4036_s30   ;;  %s3467_s29 = sphi %s3554_s29, %s4035_s29  }
   0xd   : > { %s270_s13 = sshll.u32 %s3481_s12, 4  ;;  %p2587_p0 = scmp.ge.s32.totalorder %s3479_s11, 1  ;;  %s271_s13 = int_to_ptr.vmem [resolvable:$true] %s270_s13 }
   0xe   : > { %p4007_p1 = scmp.eq.s32.totalorder %s3575_s14, 0  ;;  %p255_p2 = scmp.lt.s32.totalorder %s3479_s11, 3 }
   0xf   : > { %s3482_s16 = smov [#allocation10]   ;;  %s3483_s19 = smov [#allocation9]  }
  0x10   : > { %p3580_p3 = pnand %p2587_p0, %p255_p2  ;;  %s294_s17 = sshll.u32 %s3482_s16, 4  ;;  %s3593_s17 = int_to_ptr.vmem [resolvable:$true] %s294_s17 }
  0x11   : > { %s3595_s20 = sshll.u32 %s3483_s19, 4  ;;  %s3256_s22 = scalar_lea.vmem %s271_s13, 3072  ;;  %s285_s20 = int_to_ptr.vmem [resolvable:$true] %s3595_s20 }
  0x12   : > { %s4014_s15 = scalar_select %p3580_p3, 1, 0 }
  0x13   : > { %p2999_p5 = pneg %p3580_p3  ;;  %p3257_p8 = scmp.ne.s32.totalorder %s271_s13, %s3256_s22 }
  0x14   : > { %p3264_p11 = scmp.lt.s32.totalorder %s271_s13, %s271_s13  ;;  %p3265_p12 = scmp.lt.s32.totalorder %s3256_s22, %s3256_s22 }
  0x15   : > { %p3589_p6 = pnand %p2999_p5, %p4007_p1 }
  0x16   : > { %p3266_p13 = por %p3265_p12, %p3264_p11 }
  0x17   : > { %p3599_p7 = pneg %p3589_p6 }
  0x19   : > { %p3259_p9 = pnand %p3257_p8, %p3599_p7 }
  0x1b   : > { %p3260_p10 = pneg %p3259_p9 }
  0x1d   : > { %p3267_p0 = pnand %p3266_p13, %p3260_p10 }
  0x1f   : > { %3270 = shalt.err (!%p3267_p0)
}
  0x20   : > { %s3484_s23 = smov 192   ;;  %s3485_s24 = smov 12  }
  0x21   : > { %s4017_s2 = sld [smem:[#allocation21_spill]]  ;;  %s3282_s26 = scalar_lea.vmem %s3593_s17, 1024 }
  0x22   : > { %p3283_p2 = scmp.ne.s32.totalorder %s3593_s17, %s3282_s26  ;;  %p3290_p9 = scmp.lt.s32.totalorder %s3593_s17, %s3593_s17 }
  0x23   : > { %p3291_p10 = scmp.lt.s32.totalorder %s3282_s26, %s3282_s26 }
  0x24   : > { %p3285_p5 = pnand %p3283_p2, %p3599_p7 }
  0x25   : > { %p3292_p11 = por %p3291_p10, %p3290_p9 }
  0x26   : > { %p3286_p8 = pneg %p3285_p5 }
  0x27   : > { %3002 = dma.hbm_to_vmem [thread:$0]  (!%p3589_p6), %s4017_s2, 3072, %s271_s13, [#allocation8], %s3484_s23, %s3484_s23, %s3485_s24  }
  0x28   : > { %p3293_p12 = pnand %p3292_p11, %p3286_p8 }
  0x2a   : > { %3296 = shalt.err (!%p3293_p12)
}
  0x2b   : > { %s3486_s27 = smov 64   ;;  %s3487_s28 = smov 4  }
  0x2c   : > { %s4018_s4 = sld [smem:[#allocation23_spill]]  ;;  %s3308_s16 = scalar_lea.vmem %s285_s20, 48 }
  0x2d   : > { %p3309_p13 = scmp.ne.s32.totalorder %s285_s20, %s3308_s16  ;;  %s3315_s19 = scalar_lea.vmem %s285_s20, 64 }
  0x2e   : > { %p3316_p5 = scmp.lt.s32.totalorder %s285_s20, %s285_s20  ;;  %p3317_p8 = scmp.lt.s32.totalorder %s3315_s19, %s3308_s16 }
  0x2f   : > { %p3311_p0 = pnand %p3309_p13, %p3599_p7 }
  0x30   : > { %p3318_p9 = por %p3317_p8, %p3316_p5 }
  0x31   : > { %p3312_p2 = pneg %p3311_p0 }
  0x32   : > { %3008 = dma.hbm_to_vmem [thread:$0]  (!%p3589_p6), %s4018_s4, 1024, %s3593_s17, [#allocation11], %s3486_s27, %s3486_s27, %s3487_s28  }
  0x33   : > { %p3319_p10 = pnand %p3318_p9, %p3312_p2 }
  0x35   : > { %3322 = shalt.err (!%p3319_p10)
}
  0x36   : > { %s4019_s3 = sld [smem:[#allocation22_spill]]  ;;  %s3488_s17 = smov [#allocation12]  }
  0x37   : > { %s310_s24 = sshll.u32 %s3488_s17, 4  ;;  %s311_s24 = int_to_ptr.vmem [resolvable:$true] %s310_s24 }
  0x38   : > { %s3334_s0 = scalar_lea.vmem %s311_s24, 4096  ;;  %p3342_p0 = scmp.lt.s32.totalorder %s311_s24, %s311_s24 }
  0x39   : > { %p3335_p11 = scmp.ne.s32.totalorder %s311_s24, %s3334_s0  ;;  %p3343_p4 = scmp.lt.s32.totalorder %s3334_s0, %s3334_s0 }
  0x3b   : > { %p3337_p12 = pnand %p3335_p11, %p3599_p7  ;;  %p3344_p5 = por %p3343_p4, %p3342_p0 }
  0x3c   : > { %3005 = dma.hbm_to_vmem [thread:$0]  (!%p3589_p6), %s4019_s3, 48, %s285_s20, [#allocation8]  }
  0x3d   : > { %p3338_p13 = pneg %p3337_p12 }
  0x3f   : > { %p3345_p2 = pnand %p3344_p5, %p3338_p13 }
  0x41   : > { %3348 = shalt.err (!%p3345_p2)
}
  0x42   : > { %s3489_s25 = smov 256   ;;  %s3490_s26 = smov 16  }
  0x43   : > { %3011 = dma.hbm_to_vmem [thread:$0]  (!%p3589_p6), %s4003_s6, 4096, %s311_s24, [#allocation11], %s3489_s25, %s3489_s25, %s3490_s26  }
  0x44   : > { %s3491_s13 = smov [#allocation13]  }
  0x45   : > { %s326_s16 = sshll.u32 %s3491_s13, 4  ;;  %s327_s16 = int_to_ptr.vmem [resolvable:$true] %s326_s16 }
  0x46   : > { %s3360_s19 = scalar_lea.vmem %s327_s16, 4096  ;;  %p3368_p4 = scmp.lt.s32.totalorder %s327_s16, %s327_s16 }
  0x47   : > { %p3361_p8 = scmp.ne.s32.totalorder %s327_s16, %s3360_s19  ;;  %p3369_p11 = scmp.lt.s32.totalorder %s3360_s19, %s3360_s19 }
  0x49   : > { %p3363_p9 = pnand %p3361_p8, %p3599_p7  ;;  %p3370_p12 = por %p3369_p11, %p3368_p4 }
  0x4b   : > { %p3364_p10 = pneg %p3363_p9 }
  0x4d   : > { %p3371_p13 = pnand %p3370_p12, %p3364_p10 }
  0x4f   : > { %3374 = shalt.err (!%p3371_p13)
}
  0x50   : > { %3014 = dma.hbm_to_vmem [thread:$0]  (!%p3589_p6), %s4005_s8, 4096, %s327_s16, [#allocation14], %s3486_s27, %s3486_s27, %s3487_s28  }
  0x51   : > { %s2586_s18 = sadd.s32 4294967294, %s3479_s11   ;;  %s3652_s21 = sadd.s32 1, %s3479_s11  }
  0x52   : > { %s58_s17 = sadd.s32 1, %s3475_s10  ;;  %s55_s24 = ssub.s32 %s3479_s11, %s3652_s21 }
  0x53   : > { %p65_p7 = scmp.ne.s32.totalorder %s3475_s10, %s3471_s30  ;;  %p56_p0 = scmp.eq.s32.totalorder %s55_s24, 0 }
  0x54   : > { %p66_p5 = scmp.eq.s32.totalorder %s3479_s11, 0  ;;  %p71_p2 = scmp.ne.s32.totalorder %s3471_s30, %s3467_s29 }
  0x55   : > { %p242_p8 = scmp.eq.s32.totalorder %s3575_s14, 1  ;;  %p248_p4 = scmp.eq.s32.totalorder %s2586_s18, 1 }
  0x56   : > { %s3664_s0 = scalar_select %p56_p0, %s3475_s10, %s58_s17  }
  0x57   : > { %p67_p9 = por %p66_p5, %p65_p7  ;;  %p3668_p10 = por %p4007_p1, %p71_p2 }
  0x58   : > { %p3672_p6 = por %p242_p8, %p65_p7  ;;  %p3028_p11 = scmp.lt.s32.totalorder %s3479_s11, 2 }
  0x59   : > { %s4020_s25 = scalar_select %p3668_p10, 1, 0 }
  0x5a   : > { %s4021_s27 = scalar_select %p3672_p6, 1, 0 }
  0x5b   : > { %s340_s28 = sand.u32 1, %s3475_s10   ;;  %p3678_p12 = por %p248_p4, %p71_p2 }
  0x5c   : > { %s2594_s12 = sshll.u32 %s340_s28, 3  ;;  %s2595_s20 = sshll.u32 %s3479_s11, 7 }
  0x5d   : > { %s4022_s26 = scalar_select %p3678_p12, 1, 0 }
  0x5e   : > { %s3686_s19 = scalar_lea.hbm %s3998_s1, %s2595_s20  ;;  %s344_s22 = scalar_lea.vmem [#allocation4], %s2594_s12 }
  0x5f   : > { %s351_s23 = sshll.u32 %s344_s22, 4  ;;  %p3688_p13 = pnand %p3028_p11, %p67_p9  ;;  %s352_s23 = int_to_ptr.vmem [resolvable:$true] %s351_s23 }
  0x60   : > { %s341_s17 = scalar_lea.sflag [#allocation5], %s340_s28  ;;  %s3375_s24 = scalar_lea.hbm %s3686_s19, 128 }
  0x61   : > { %p3376_p7 = scmp.ne.s32.totalorder %s3686_s19, %s3375_s24  ;;  %p3377_p0 = pneg %p3688_p13 }
  0x62   : > { %s3380_s16 = scalar_lea.hbm %s3998_s1, 256  ;;  %p3381_p8 = scmp.lt.s32.totalorder %s3686_s19, %s3998_s1 }
  0x63   : > { %p3378_p5 = pnand %p3377_p0, %p3376_p7  ;;  %p3382_p9 = scmp.lt.s32.totalorder %s3380_s16, %s3375_s24 }
  0x65   : > { %p3379_p2 = pneg %p3378_p5  ;;  %p3383_p4 = por %p3382_p9, %p3381_p8 }
  0x67   : > { %p3384_p11 = pnand %p3383_p4, %p3379_p2 }
  0x69   : > { %3387 = shalt.err (!%p3384_p11)
}
  0x6a   : > { %s3388_s22 = scalar_lea.vmem %s352_s23, 128  ;;  %s3492_s28 = smov [#allocation4]  }
  0x6b   : > { %p3389_p1 = scmp.ne.s32.totalorder %s352_s23, %s3388_s22  ;;  %s3393_s3 = sshll.u32 %s3492_s28, 4  ;;  %s3394_s3 = int_to_ptr.vmem [resolvable:$false] %s3393_s3 }
  0x6c   : > { %s3395_s4 = scalar_lea.vmem %s3394_s3, 256  ;;  %p3396_p7 = scmp.lt.s32.totalorder %s352_s23, %s3394_s3 }
  0x6d   : > { %p3391_p12 = pnand %p3389_p1, %p3377_p0  ;;  %p3397_p5 = scmp.lt.s32.totalorder %s3395_s4, %s3388_s22 }
  0x6f   : > { %p3392_p6 = pneg %p3391_p12  ;;  %p3398_p10 = por %p3397_p5, %p3396_p7 }
  0x71   : > { %p3399_p3 = pnand %p3398_p10, %p3392_p6 }
  0x73   : > { %3402 = shalt.err (!%p3399_p3)
}
  0x74   : > { %3018 = dma.hbm_to_vmem [thread:$0]  (!%p3688_p13), %s3686_s19, 128, %s352_s23, %s341_s17  }
  0x75   : > { %p4024_p2 = scmp.ne.s32.totalorder %s4014_s15, 0 }
  0x76   : > { %s3709_s2 = sand.u32 (!%p4024_p2), 1, %s3471_s30   ;;  %p4025_p1 = scmp.ne.s32.totalorder (!%p4024_p2), %s4020_s25, 0 }
  0x77   : > { %360 = sbr.rel (%p4024_p2) target bundleno = 3017 (0xbc9), region = 56  ;;  %s2597_s24 = sshll.u32 (!%p4024_p2), %s3709_s2, 3 }
  0x78   : > { %s363_s3 = scalar_lea.sflag (!%p4024_p2), [#allocation5], %s3709_s2  ;;  %s3715_s4 = scalar_lea.vmem (!%p4024_p2), [#allocation4], %s2597_s24 }
  0x7c   : > { %3446 = dma.done.wait (%p4025_p1), %s363_s3, 128  }
  0x7d   : > { %3448 = vsyncadd (%p4025_p1), %s363_s3, 4294967168  ;;  %p4026_p3 = scmp.eq.s32.totalorder %s3575_s14, 0 }
  0x7f   : > { %3450 = dma.done.wait (%p4026_p3), [#allocation8], 3120   ;;  %p4027_p10 = pmov %p4026_p3 }
  0x80   : > { %p4028_p6 = pmov %p4026_p3 }
  0x81   : > { %3452 = vsyncadd (%p4027_p10), [#allocation8], 4294964176 }
  0x82   : > { %3454 = dma.done.wait (%p4028_p6), [#allocation11], 5120   ;;  %p4029_p12 = pmov %p4026_p3 }
  0x83   : > { %p4030_p13 = pmov %p4026_p3 }
  0x84   : > { %3456 = vsyncadd (%p4029_p12), [#allocation11], 4294962176 }
  0x85   : > { %3458 = dma.done.wait (%p4030_p13), [#allocation14], 4096   ;;  %p4031_p0 = pmov %p4026_p3 }
  0x86   : > { %v3493_v0 = vmov 0   ;;  %v3494_v1 = vmov 0.0   ;;  %v3088_v2 = vld [vmem:[#allocation7 + $0xac] ss:$12 sps:$4 sm:$0xff]   ;;  %v3090_v3 = vld [vmem:[#allocation7 + $0xa8] ss:$12 sps:$4 sm:$0xff]   ;;  %v458_v28 = vlaneseq }
  0x87   : > { %3460 = vsyncadd (%p4031_p0), [#allocation14], 4294963200  ;;  %633 = vmatprep.mubr.bf16.mxu0 %v3493_v0  ;;  %2839 = vmatprep.subr.bf16.mxu1 %v3494_v1  ;;  %v3091_v4 = vld [vmem:[#allocation7 + $0x94] ss:$12 sps:$4 sm:$0xff]   ;;  %v3093_v5 = vld [vmem:[#allocation7 + $0x90] ss:$12 sps:$4 sm:$0xff]  }
  0x88   : > { %601 = vmatprep.subr.bf16.mxu0 %v3088_v2  ;;  %v3094_v6 = vld [vmem:[#allocation7 + $0x7c] ss:$12 sps:$4 sm:$0xff]   ;;  %v3096_v7 = vld [vmem:[#allocation7 + $0x78] ss:$12 sps:$4 sm:$0xff]   ;;  %v3099_v9 = vld [vmem:[#allocation7 + $0x60] ss:$12 sps:$4 sm:$0xff]  }
  0x89   : > { %602 = vmatpush1.bf16.msra.mxu0 %v3090_v3  ;;  %v3097_v8 = vld [vmem:[#allocation7 + $0x64] ss:$12 sps:$4 sm:$0xff]   ;;  %v3100_v11 = vld [vmem:[#allocation7 + $0x4c] ss:$12 sps:$4 sm:$0xff]   ;;  %v3102_v13 = vld [vmem:[#allocation7 + $0x48] ss:$12 sps:$4 sm:$0xff]  }
  0x8a   : > { %603 = vmatprep.subr.bf16.mxu0 %v3091_v4  ;;  %v3112_v10 = vld [vmem:[#allocation7 + $0xb0] ss:$12 sps:$4 sm:$0xff]   ;;  %v3113_v12 = vld [vmem:[#allocation7 + $0x98] ss:$12 sps:$4 sm:$0xff]   ;;  %v3103_v14 = vld [vmem:[#allocation7 + $0x34] ss:$12 sps:$4 sm:$0xff]  }
  0x8b   : > { %2840 = vmatpush3.bf16.msra.mxu1 %v3112_v10  ;;  %v3105_v15 = vld [vmem:[#allocation7 + $0x30] ss:$12 sps:$4 sm:$0xff]   ;;  %v3114_v16 = vld [vmem:[#allocation7 + $0x80] ss:$12 sps:$4 sm:$0xff]   ;;  %v3115_v18 = vld [vmem:[#allocation7 + $0x68] ss:$12 sps:$4 sm:$0xff]  }
  0x8c   : > { %2841 = vmatprep.subr.bf16.mxu1 %v3494_v1  ;;  %v3106_v17 = vld [vmem:[#allocation7 + $0x1c] ss:$12 sps:$4 sm:$0xff]   ;;  %v3108_v19 = vld [vmem:[#allocation7 + $0x18] ss:$12 sps:$4 sm:$0xff]   ;;  %v3111_v22 = vld [vmem:[#allocation7] ss:$12 sps:$4 sm:$0xff]  }
  0x8d   : > { %604 = vmatpush1.bf16.msra.mxu0 %v3093_v5  ;;  %v3109_v20 = vld [vmem:[#allocation7 + $0x4] ss:$12 sps:$4 sm:$0xff]   ;;  %v3118_v26 = vld [vmem:[#allocation7 + $0x20] ss:$12 sps:$4 sm:$0xff]   ;;  %v3119_v27 = vld [vmem:[#allocation7 + $0x8] ss:$12 sps:$4 sm:$0xff]  }
  0x8e   : > { %605 = vmatprep.subr.bf16.mxu0 %v3094_v6  ;;  %v3116_v21 = vld [vmem:[#allocation7 + $0x50] ss:$12 sps:$4 sm:$0xff]   ;;  %v3117_v24 = vld [vmem:[#allocation7 + $0x38] ss:$12 sps:$4 sm:$0xff]   ;;  %vm3495_vm0 = vmmov 0   ;;  %v3751_v29 = vshrl.u32 %v458_v28, 7 }
  0x8f   : > { %2842 = vmatpush3.bf16.msra.mxu1 %v3113_v12  ;;  %v422_v23 = vld [vmem:[%s3715_s4] sm:$0xff]  ;;  %2855 = vmatprep.mubr.msk.bf16.mxu1 %vm3495_vm0, %v3494_v1  ;;  %v456_v32 = vld [vmem:[#allocation9] sm:$0x7]  ;;  %vm685_vm1 = vcmask 130048   ;;  %s3496_s15 = smov 112   ;;  %s3497_s25 = smov 96  }
  0x90   : > { %2843 = vmatprep.subr.bf16.mxu1 %v3494_v1  ;;  %v423_v25 = vpack.c.bf16 %v422_v23, %v422_v23  ;;  %v464_v30 = vsub.s32 1, %v3751_v29  ;;  %v460_v31 = vsub.s32 0, %v3751_v29  ;;  %s3498_s19 = smov 80   ;;  %s3499_s23 = smov 64   ;;  %v468_v44 = vsub.s32 2, %v3751_v29 }
  0x91   : > { %606 = vmatpush1.bf16.msra.mxu0 %v3096_v7  ;;  %s3500_s18 = smov 48   ;;  %s3501_s17 = smov 32   ;;  %vm748_vm2 = vcmask 1043456   ;;  %vm732_vm3 = vcmask 64512   ;;  %vm793_vm4 = vcmask 125952   ;;  %vm915_vm5 = vcmask 257152  }
  0x92   : > { %607 = vmatprep.subr.bf16.mxu0 %v3097_v8  ;;  %v465_v33 = vrot.slane %v456_v32, %v464_v30  ;;  %v461_v35 = vrot.slane %v456_v32, %v460_v31  ;;  %s3502_s20 = smov 16   ;;  %v469_v45 = vrot.slane %v456_v32, %v468_v44  ;;  %vm1034_vm6 = vcmask 388352   ;;  %s2735_s13 = sshll.u32 %s3575_s14, 7 }
  0x93   : > { %2844 = vmatpush3.bf16.msra.mxu1 %v3114_v16  ;;  %vm1153_vm7 = vcmask 519552   ;;  %vm1272_vm8 = vcmask 650752   ;;  %vm1391_vm9 = vcmask 781952   ;;  %vm1510_vm10 = vcmask 913152   ;;  %s420_s16 = scalar_lea.vmem [#allocation15], %s2597_s24  ;;  %s2466_s3 = scalar_lea.hbm %s4006_s9, %s2735_s13 }
  0x94   : > { %2845 = vmatprep.subr.bf16.mxu1 %v3494_v1  ;;  %vm1629_vm11 = vcmask 1044352   ;;  %s2468_s12 = sshll.u32 %s420_s16, 4  ;;  %p4032_p9 = scmp.ne.s32.totalorder %s4021_s27, 0  ;;  %s2469_s12 = int_to_ptr.vmem [resolvable:$true] %s2468_s12 }
  0x95   : > { %608 = vmatpush1.bf16.msra.mxu0 %v3099_v9 }
  0x96   : > { %609 = vmatprep.subr.bf16.mxu0 %v3100_v11 }
  0x97   : > { %2846 = vmatpush3.bf16.msra.mxu1 %v3115_v18 }
  0x98   : > { %2847 = vmatprep.subr.bf16.mxu1 %v3494_v1 }
  0x99   : > { %610 = vmatpush1.bf16.msra.mxu0 %v3102_v13 }
  0x9a   : > { %611 = vmatprep.subr.bf16.mxu0 %v3103_v14 }
  0x9b   : > { %2848 = vmatpush3.bf16.msra.mxu1 %v3116_v21 }
  0x9c   : > { %2849 = vmatprep.subr.bf16.mxu1 %v3494_v1 }
  0x9d   : > { %612 = vmatpush1.bf16.msra.mxu0 %v3105_v15 }
  0x9e   : > { %613 = vmatprep.subr.bf16.mxu0 %v3106_v17 }
  0x9f   : > { %2850 = vmatpush3.bf16.msra.mxu1 %v3117_v24 }
  0xa0   : > { %2851 = vmatprep.subr.bf16.mxu1 %v3494_v1 }
  0xa1   : > { %614 = vmatpush1.bf16.msra.mxu0 %v3108_v19 }
  0xa2   : > { %615 = vmatprep.subr.bf16.mxu0 %v3109_v20 }
  0xa3   : > { %2852 = vmatpush3.bf16.msra.mxu1 %v3118_v26 }
  0xa4   : > { %2853 = vmatprep.subr.bf16.mxu1 %v3494_v1 }
  0xa5   : > { %616 = vmatpush1.bf16.msra.mxu0 %v3111_v22 }
  0xa6   : > { %2883 = vmatprep.subr.bf16.mxu0 %v3494_v1 }
  0xa7   : > { %2854 = vmatpush3.bf16.msra.mxu1 %v3119_v27 }
  0xa8   : > { %634 = vmatmul.mubr.bf16.vlgmr.msra.gmra.mxu0 %v423_v25  ;;  %2859 = vmatprep.subr.bf16.mxu1 %v3494_v1 }
  0xa9   : > { %2885 = vmatprep.mubr.msk.bf16.mxu0 %vm3495_vm0, %v3494_v1 }
  0xaa   : > { %2856 = vmatmul.mubr.bf16.vlgmr.msra.gmra.mxu1 %v423_v25 }
  0xab   : > { %2861 = vmatprep.mubr.msk.bf16.mxu1 %vm3495_vm0, %v3494_v1 }
 0x168   : > { %v635_v34 = vpop.f32.mrf.mxu0 }
 0x169   : > { %v636_v39 = vadd.f32 %v635_v34, %v461_v35 }
 0x16a   : > { %v637_v36 = vpop.f32.mrf.mxu0  ;;  %v676_v46 = vpop.f32.mrf.mxu1 }
 0x16b   : > { %v638_v37 = vadd.f32 %v637_v36, %v465_v33  ;;  %v682_v43 = vpack.c.bf16 %v636_v39, %v636_v39  ;;  %v677_v47 = vadd.f32 %v676_v46, %v469_v45 }
 0x16c   : > { %v639_v38 = vpop.f32.mrf.mxu0  ;;  %v2857_v48 = vpop.f32.mrf.mxu1 }
 0x16d   : > { %v683_v40 = vpack.c.bf16 %v638_v37, %v638_v37  ;;  %v3777_v49 = vpack.c.bf16 %v677_v47, %v677_v47 }
 0x16e   : > { %v640_v41 = vpop.f32.mrf.mxu0  ;;  %v679_v50 = vpop.f32.mrf.mxu1 }
 0x16f   : > { %799 = vrot.lane.b32.xlu1 %v683_v40, %s3496_s15  ;;  %v690_v42 = vsel %vm685_vm1, %v683_v40, 0  ;;  %v750_v51 = vsel %vm748_vm2, %v3777_v49, 0 }
 0x170   : > { %2860 = vmatpush3.bf16.xpose.msra.mxu1 %v690_v42  ;;  %v2858_v52 = vpop.f32.mrf.mxu1 }
 0x171   : > { %2865 = vmatprep.subr.bf16.mxu1 %v3494_v1 }
 0x173   : > { %796 = vrot.lane.b32.xlu1 %v682_v43, %s3496_s15 }
 0x177   : > { %917 = vrot.lane.b32.xlu1 %v682_v43, %s3497_s25  ;;  %2862 = vmatmul.mubr.msk.bf16.vlgmr.msra.gmra.mxu1 %vm685_vm1, %v682_v43 }
 0x178   : > { %2867 = vmatprep.mubr.msk.bf16.mxu1 %vm3495_vm0, %v3494_v1  ;;  %2866 = vmatpush3.bf16.msra.mxu1 %v750_v51 }
 0x179   : > { %2871 = vmatprep.subr.bf16.mxu1 %v3494_v1 }
 0x17b   : > { %1038 = vrot.lane.b32.xlu1 %v683_v40, %s3498_s19 }
 0x17f   : > { %1036 = vrot.lane.b32.xlu1 %v682_v43, %s3498_s19 }
 0x183   : > { %1157 = vrot.lane.b32.xlu1 %v683_v40, %s3499_s23 }
 0x187   : > { %1155 = vrot.lane.b32.xlu1 %v682_v43, %s3499_s23 }
 0x18b   : > { %1276 = vrot.lane.b32.xlu1 %v683_v40, %s3500_s18 }
 0x18f   : > { %1395 = vrot.lane.b32.xlu1 %v683_v40, %s3501_s17 }
 0x193   : > { %1514 = vrot.lane.b32.xlu1 %v683_v40, %s3502_s20 }
 0x1e1   : > { %v800_v63 = vpop.permute.xlu1 %799 }
 0x1e2   : > { %v805_v14 = vsel %vm685_vm1, %v800_v63, 0 }
 0x1e5   : > { %v797_v2 = vpop.permute.xlu1 %796 }
 0x1e9   : > { %v918_v3 = vpop.permute.xlu1 %917 }
 0x1ed   : > { %v1039_v5 = vpop.permute.xlu1 %1038 }
 0x1ee   : > { %v1044_v9 = vsel %vm685_vm1, %v1039_v5, 0 }
 0x1f1   : > { %v1037_v8 = vpop.permute.xlu1 %1036 }
 0x1f5   : > { %v1158_v11 = vpop.permute.xlu1 %1157 }
 0x1f6   : > { %v1163_v16 = vsel %vm685_vm1, %v1158_v11, 0 }
 0x1f9   : > { %v1156_v15 = vpop.permute.xlu1 %1155 }
 0x1fd   : > { %v1277_v17 = vpop.permute.xlu1 %1276 }
 0x1fe   : > { %v1282_v18 = vsel %vm685_vm1, %v1277_v17, 0 }
 0x201   : > { %v1396_v19 = vpop.permute.xlu1 %1395 }
 0x202   : > { %v1401_v21 = vsel %vm685_vm1, %v1396_v19, 0 }
 0x205   : > { %v1515_v22 = vpop.permute.xlu1 %1514 }
 0x206   : > { %v1520_v24 = vsel %vm685_vm1, %v1515_v22, 0 }
 0x237   : > { %v726_v53 = vpop.f32.mrf.mxu1 }
 0x238   : > { %v733_v54 = vsel %vm732_vm3, %v726_v53, -inf }
 0x239   : > { %734 = vmax.xlane.f32.xlu0 %v733_v54  ;;  %v2863_v55 = vpop.f32.mrf.mxu1 }
 0x23b   : > { %v729_v56 = vpop.f32.mrf.mxu1 }
 0x23d   : > { %v2864_v57 = vpop.f32.mrf.mxu1 }
 0x2c2   : > { %v735_v58 = vpop.xlane.xlu0 %734 }
 0x2c3   : > { %v736_v59 = vsub.f32 %v726_v53, %v735_v58 }
 0x2c5   : > { %v737_v60 = vmul.f32 1.442695, %v736_v59 }
 0x2c7   : > { %3208 = vpow2.f32 %v737_v60 }
 0x2d4   : > { %v3209_v61 = vpop.eup %3208 }
 0x2d5   : > { %v739_v62 = vsel %vm732_vm3, %v3209_v61, 0.0 }
 0x2d6   : > { %740 = vadd.xlane.f32.xlu0 %v739_v62 }
 0x2ec   : > { %919 = vrot.lane.b32.xlu0 %v683_v40, %s3497_s25 }
 0x2f0   : > { %1274 = vrot.lane.b32.xlu0 %v682_v43, %s3500_s18 }
 0x2f4   : > { %1393 = vrot.lane.b32.xlu0 %v682_v43, %s3501_s17 }
 0x2f8   : > { %1512 = vrot.lane.b32.xlu0 %v682_v43, %s3502_s20 }
 0x35f   : > { %v741_v4 = vpop.xlane.xlu0 %740 }
 0x360   : > { %3210 = vrcp.f32 %v741_v4 }
 0x363   : > { %v920_v6 = vpop.permute.xlu0 %919 }
 0x364   : > { %v925_v7 = vsel %vm685_vm1, %v920_v6, 0 }
 0x365   : > { %2884 = vmatpush3.bf16.xpose.msra.mxu0 %v925_v7 }
 0x366   : > { %2895 = vmatprep.subr.bf16.mxu0 %v3494_v1 }
 0x367   : > { %v1275_v20 = vpop.permute.xlu0 %1274 }
 0x36b   : > { %v1394_v23 = vpop.permute.xlu0 %1393 }
 0x36c   : > { %2886 = vmatmul.mubr.msk.bf16.vlgmr.msra.gmra.mxu0 %vm685_vm1, %v918_v3 }
 0x36d   : > { %v3211_v10 = vpop.eup %3210  ;;  %2896 = vmatpush3.bf16.xpose.msra.mxu0 %v1044_v9  ;;  %2897 = vmatprep.mubr.msk.bf16.mxu0 %vm3495_vm0, %v3494_v1 }
 0x36e   : > { %v743_v12 = vmul.f32 %v3211_v10, %v3209_v61  ;;  %2907 = vmatprep.subr.bf16.mxu0 %v3494_v1 }
 0x36f   : > { %v1513_v25 = vpop.permute.xlu0 %1512 }
 0x370   : > { %v744_v13 = vpack.c.bf16 %v743_v12, %v743_v12 }
 0x372   : > { %2868 = vmatmul.mubr.msk.bf16.vlgmr.msra.gmra.mxu1 %vm732_vm3, %v744_v13 }
 0x373   : > { %2872 = vmatpush3.bf16.xpose.msra.mxu1 %v805_v14  ;;  %2873 = vmatprep.mubr.msk.bf16.mxu1 %vm3495_vm0, %v3494_v1 }
 0x374   : > { %2898 = vmatmul.mubr.msk.bf16.vlgmr.msra.gmra.mxu0 %vm685_vm1, %v1037_v8  ;;  %2877 = vmatprep.subr.bf16.mxu1 %v3494_v1 }
 0x375   : > { %2908 = vmatpush3.bf16.xpose.msra.mxu0 %v1163_v16  ;;  %2909 = vmatprep.mubr.msk.bf16.mxu0 %vm3495_vm0, %v3494_v1 }
 0x376   : > { %2919 = vmatprep.subr.bf16.mxu0 %v3494_v1 }
 0x37a   : > { %2874 = vmatmul.mubr.msk.bf16.vlgmr.msra.gmra.mxu1 %vm685_vm1, %v797_v2 }
 0x37b   : > { %2879 = vmatprep.mubr.msk.bf16.mxu1 %vm3495_vm0, %v3494_v1 }
 0x37c   : > { %2910 = vmatmul.mubr.msk.bf16.vlgmr.msra.gmra.mxu0 %vm685_vm1, %v1156_v15 }
 0x37d   : > { %2920 = vmatpush3.bf16.xpose.msra.mxu0 %v1282_v18  ;;  %2921 = vmatprep.mubr.msk.bf16.mxu0 %vm3495_vm0, %v3494_v1 }
 0x37e   : > { %2931 = vmatprep.subr.bf16.mxu0 %v3494_v1 }
 0x384   : > { %2922 = vmatmul.mubr.msk.bf16.vlgmr.msra.gmra.mxu0 %vm685_vm1, %v1275_v20 }
 0x385   : > { %2932 = vmatpush3.bf16.xpose.msra.mxu0 %v1401_v21  ;;  %2933 = vmatprep.mubr.msk.bf16.mxu0 %vm3495_vm0, %v3494_v1 }
 0x386   : > { %2943 = vmatprep.subr.bf16.mxu0 %v3494_v1 }
 0x38c   : > { %2934 = vmatmul.mubr.msk.bf16.vlgmr.msra.gmra.mxu0 %vm685_vm1, %v1394_v23 }
 0x38d   : > { %2944 = vmatpush3.bf16.xpose.msra.mxu0 %v1520_v24  ;;  %2945 = vmatprep.mubr.msk.bf16.mxu0 %vm3495_vm0, %v3494_v1 }
 0x38e   : > { %2955 = vmatprep.subr.bf16.mxu0 %v3494_v1 }
 0x394   : > { %2946 = vmatmul.mubr.msk.bf16.vlgmr.msra.gmra.mxu0 %vm685_vm1, %v1513_v25 }
 0x395   : > { %2971 = vmatprep.mubr.msk.bf16.mxu0 %vm3495_vm0, %v3494_v1 }
 0x42c   : > { %v961_v26 = vpop.f32.mrf.mxu0 }
 0x42d   : > { %v967_v27 = vsel %vm732_vm3, %v961_v26, -inf }
 0x42e   : > { %968 = vmax.xlane.f32.xlu0 %v967_v27  ;;  %v2887_v28 = vpop.f32.mrf.mxu0 }
 0x430   : > { %v964_v32 = vpop.f32.mrf.mxu0 }
 0x432   : > { %v786_v33 = vpop.f32.mrf.mxu1  ;;  %v2888_v34 = vpop.f32.mrf.mxu0 }
 0x433   : > { %v792_v35 = vpack.c.bf16 %v786_v33, %v786_v33 }
 0x434   : > { %v2869_v36 = vpop.f32.mrf.mxu1  ;;  %v1080_v37 = vpop.f32.mrf.mxu0 }
 0x435   : > { %794 = vst.msk [vmem:[#allocation2] sm:$0xf] %vm793_vm4, %v792_v35  ;;  %v1086_v38 = vsel %vm732_vm3, %v1080_v37, -inf }
 0x436   : > { %1087 = vmax.xlane.f32.xlu0 %v1086_v38  ;;  %v789_v39 = vpop.f32.mrf.mxu1  ;;  %v2899_v40 = vpop.f32.mrf.mxu0 }
 0x438   : > { %v2870_v41 = vpop.f32.mrf.mxu1  ;;  %v1083_v42 = vpop.f32.mrf.mxu0 }
 0x43a   : > { %v841_v43 = vpop.f32.mrf.mxu1  ;;  %v2900_v45 = vpop.f32.mrf.mxu0 }
 0x43b   : > { %v847_v46 = vsel %vm732_vm3, %v841_v43, -inf }
 0x43c   : > { %v1199_v47 = vpop.f32.mrf.mxu0  ;;  %848 = vmax.xlane.f32.xlu1 %v847_v46  ;;  %v2875_v48 = vpop.f32.mrf.mxu1 }
 0x43d   : > { %v1205_v52 = vsel %vm732_vm3, %v1199_v47, -inf }
 0x43e   : > { %v844_v50 = vpop.f32.mrf.mxu1  ;;  %v2911_v51 = vpop.f32.mrf.mxu0 }
 0x440   : > { %v1202_v53 = vpop.f32.mrf.mxu0  ;;  %1206 = vmax.xlane.f32.xlu1 %v1205_v52  ;;  %v2876_v54 = vpop.f32.mrf.mxu1 }
 0x442   : > { %v2912_v55 = vpop.f32.mrf.mxu0 }
 0x444   : > { %v1318_v56 = vpop.f32.mrf.mxu0 }
 0x445   : > { %v1324_v57 = vsel %vm732_vm3, %v1318_v56, -inf }
 0x446   : > { %1325 = vmax.xlane.f32.xlu0 %v1324_v57  ;;  %v2923_v58 = vpop.f32.mrf.mxu0 }
 0x448   : > { %v1321_v59 = vpop.f32.mrf.mxu0 }
 0x44a   : > { %v2924_v60 = vpop.f32.mrf.mxu0 }
 0x44c   : > { %v1437_v61 = vpop.f32.mrf.mxu0 }
 0x44d   : > { %v1443_v62 = vsel %vm732_vm3, %v1437_v61, -inf }
 0x44e   : > { %v2935_v63 = vpop.f32.mrf.mxu0  ;;  %1444 = vmax.xlane.f32.xlu1 %v1443_v62 }
 0x450   : > { %v1440_v2 = vpop.f32.mrf.mxu0 }
 0x452   : > { %v2936_v3 = vpop.f32.mrf.mxu0 }
 0x454   : > { %v1556_v4 = vpop.f32.mrf.mxu0 }
 0x455   : > { %v1562_v5 = vsel %vm732_vm3, %v1556_v4, -inf }
 0x456   : > { %1563 = vmax.xlane.f32.xlu0 %v1562_v5  ;;  %v2947_v6 = vpop.f32.mrf.mxu0 }
 0x458   : > { %v1559_v7 = vpop.f32.mrf.mxu0 }
 0x45a   : > { %v2948_v8 = vpop.f32.mrf.mxu0 }
 0x4b7   : > { %v969_v9 = vpop.xlane.xlu0 %968 }
 0x4b8   : > { %v970_v10 = vsub.f32 %v961_v26, %v969_v9 }
 0x4ba   : > { %v971_v11 = vmul.f32 1.442695, %v970_v10 }
 0x4bc   : > { %3212 = vpow2.f32 %v971_v11 }
 0x4bf   : > { %v1088_v12 = vpop.xlane.xlu0 %1087 }
 0x4c0   : > { %v1089_v13 = vsub.f32 %v1080_v37, %v1088_v12 }
 0x4c2   : > { %v1090_v14 = vmul.f32 1.442695, %v1089_v13 }
 0x4c4   : > { %3214 = vpow2.f32 %v1090_v14 }
 0x4c5   : > { %v849_v15 = vpop.xlane.xlu1 %848 }
 0x4c6   : > { %v850_v16 = vsub.f32 %v841_v43, %v849_v15 }
 0x4c8   : > { %v851_v17 = vmul.f32 1.442695, %v850_v16 }
 0x4c9   : > { %v3833_v18 = vpop.eup %3212  ;;  %v1207_v19 = vpop.xlane.xlu1 %1206 }
 0x4ca   : > { %3216 = vpow2.f32 %v851_v17  ;;  %v1208_v20 = vsub.f32 %v1199_v47, %v1207_v19  ;;  %v973_v21 = vsel %vm732_vm3, %v3833_v18, 0.0 }
 0x4cb   : > { %974 = vadd.xlane.f32.xlu0 %v973_v21 }
 0x4cc   : > { %v1209_v22 = vmul.f32 1.442695, %v1208_v20 }
 0x4ce   : > { %3218 = vpow2.f32 %v1209_v22 }
 0x4cf   : > { %v1326_v23 = vpop.xlane.xlu0 %1325 }
 0x4d0   : > { %v1327_v24 = vsub.f32 %v1318_v56, %v1326_v23 }
 0x4d1   : > { %v3837_v25 = vpop.eup %3214 }
 0x4d2   : > { %v1328_v26 = vmul.f32 1.442695, %v1327_v24  ;;  %v1092_v27 = vsel %vm732_vm3, %v3837_v25, 0.0 }
 0x4d3   : > { %1093 = vadd.xlane.f32.xlu1 %v1092_v27 }
 0x4d4   : > { %3220 = vpow2.f32 %v1328_v26 }
 0x4d7   : > { %v3217_v28 = vpop.eup %3216  ;;  %v1445_v37 = vpop.xlane.xlu1 %1444 }
 0x4d8   : > { %v853_v32 = vsel %vm732_vm3, %v3217_v28, 0.0  ;;  %v1446_v38 = vsub.f32 %v1437_v61, %v1445_v37 }
 0x4d9   : > { %854 = vadd.xlane.f32.xlu1 %v853_v32 }
 0x4da   : > { %v1447_v39 = vmul.f32 1.442695, %v1446_v38 }
 0x4db   : > { %v3842_v33 = vpop.eup %3218 }
 0x4dc   : > { %v1211_v34 = vsel %vm732_vm3, %v3842_v33, 0.0  ;;  %3222 = vpow2.f32 %v1447_v39 }
 0x4dd   : > { %1212 = vadd.xlane.f32.xlu0 %v1211_v34 }
 0x4df   : > { %v1564_v40 = vpop.xlane.xlu0 %1563 }
 0x4e0   : > { %v1565_v41 = vsub.f32 %v1556_v4, %v1564_v40 }
 0x4e1   : > { %v3846_v35 = vpop.eup %3220 }
 0x4e2   : > { %v1330_v36 = vsel %vm732_vm3, %v3846_v35, 0.0  ;;  %v1566_v42 = vmul.f32 1.442695, %v1565_v41 }
 0x4e3   : > { %1331 = vadd.xlane.f32.xlu0 %v1330_v36 }
 0x4e4   : > { %3224 = vpow2.f32 %v1566_v42 }
 0x4e9   : > { %v3856_v43 = vpop.eup %3222 }
 0x4ea   : > { %860 = vrot.lane.b32.xlu1 %v3777_v49, %s3496_s15  ;;  %v1449_v45 = vsel %vm732_vm3, %v3856_v43, 0.0 }
 0x4f1   : > { %v3860_v46 = vpop.eup %3224 }
 0x4f2   : > { %v1568_v47 = vsel %vm732_vm3, %v3860_v46, 0.0 }
 0x4f9   : > { %979 = vrot.lane.b32.xlu0 %v3777_v49, %s3497_s25 }
 0x4fd   : > { %1098 = vrot.lane.b32.xlu0 %v3777_v49, %s3498_s19 }
 0x50e   : > { %1450 = vadd.xlane.f32.xlu1 %v1449_v45 }
 0x51c   : > { %1569 = vadd.xlane.f32.xlu0 %v1568_v47  ;;  %v3120_v47 = vld [vmem:[#allocation10 + $0x38] sm:$0xff]  }
 0x51d   : > { %2956 = vmatpush3.bf16.msra.mxu0 %v3120_v47  ;;  %v3146_v47 = vld [vmem:[#allocation12 + $0x80] ss:$16 sps:$4 sm:$0xff]  }
 0x51e   : > { %2957 = vmatprep.subr.bf16.mxu0 %v3494_v1 }
 0x51f   : > { %1217 = vrot.lane.b32.xlu1 %v3777_v49, %s3499_s23 }
 0x523   : > { %1455 = vrot.lane.b32.xlu1 %v3777_v49, %s3501_s17 }
 0x527   : > { %1574 = vrot.lane.b32.xlu1 %v3777_v49, %s3502_s20 }
 0x532   : > { %1336 = vrot.lane.b32.xlu0 %v3777_v49, %s3500_s18 }
 0x554   : > { %v975_v51 = vpop.xlane.xlu0 %974 }
 0x55c   : > { %v1094_v48 = vpop.xlane.xlu1 %1093 }
 0x562   : > { %v855_v50 = vpop.xlane.xlu1 %854 }
 0x563   : > { %3226 = vrcp.f32 %v855_v50 }
 0x564   : > { %3228 = vrcp.f32 %v975_v51 }
 0x565   : > { %3230 = vrcp.f32 %v1094_v48  ;;  %v3121_v48 = vld [vmem:[#allocation10 + $0x30] sm:$0xff]  }
 0x566   : > { %v861_v52 = vpop.permute.xlu1 %860  ;;  %v1213_v54 = vpop.xlane.xlu0 %1212  ;;  %2958 = vmatpush3.bf16.msra.mxu0 %v3121_v48  ;;  %v3148_v48 = vld [vmem:[#allocation12 + $0x84] ss:$16 sps:$4 sm:$0xff]  }
 0x567   : > { %v866_v53 = vsel %vm748_vm2, %v861_v52, 0  ;;  %3232 = vrcp.f32 %v1213_v54  ;;  %2959 = vmatprep.subr.bf16.mxu0 %v3494_v1  ;;  %v3122_v54 = vld [vmem:[#allocation10 + $0x28] sm:$0xff]  }
 0x568   : > { %2878 = vmatpush3.bf16.msra.mxu1 %v866_v53 }
 0x569   : > { %2889 = vmatprep.subr.bf16.mxu1 %v3494_v1 }
 0x56a   : > { %2960 = vmatpush3.bf16.msra.mxu0 %v3122_v54  ;;  %v3152_v54 = vld [vmem:[#allocation12 + $0x60] ss:$16 sps:$4 sm:$0xff]  }
 0x56b   : > { %2961 = vmatprep.subr.bf16.mxu0 %v3494_v1 }
 0x56c   : > { %v1332_v55 = vpop.xlane.xlu0 %1331 }
 0x56d   : > { %3234 = vrcp.f32 %v1332_v55 }
 0x570   : > { %v3227_v56 = vpop.eup %3226  ;;  %v980_v58 = vpop.permute.xlu0 %979 }
 0x571   : > { %v857_v57 = vmul.f32 %v3227_v56, %v3217_v28  ;;  %v3229_v60 = vpop.eup %3228  ;;  %v985_v49 = vsel %vm748_vm2, %v980_v58, 0  ;;  %v3123_v56 = vld [vmem:[#allocation10 + $0x20] sm:$0xff]  }
 0x572   : > { %v977_v61 = vmul.f32 %v3229_v60, %v3833_v18  ;;  %v3231_v2 = vpop.eup %3230  ;;  %2962 = vmatpush3.bf16.msra.mxu0 %v3123_v56  ;;  %v3160_v56 = vld [vmem:[#allocation12 + $0x44] ss:$16 sps:$4 sm:$0xff]  }
 0x573   : > { %v858_v59 = vpack.c.bf16 %v857_v57, %v857_v57  ;;  %v1096_v4 = vmul.f32 %v3231_v2, %v3837_v25  ;;  %2963 = vmatprep.subr.bf16.mxu0 %v3494_v1  ;;  %v3124_v57 = vld [vmem:[#allocation10 + $0x18] sm:$0xff]  }
 0x574   : > { %v1099_v62 = vpop.permute.xlu0 %1098  ;;  %v978_v63 = vpack.c.bf16 %v977_v61, %v977_v61  ;;  %v3233_v6 = vpop.eup %3232 }
 0x575   : > { %2880 = vmatmul.mubr.msk.bf16.vlgmr.msra.gmra.mxu1 %vm732_vm3, %v858_v59  ;;  %v1104_v3 = vsel %vm748_vm2, %v1099_v62, 0  ;;  %v1097_v5 = vpack.c.bf16 %v1096_v4, %v1096_v4  ;;  %v1215_v8 = vmul.f32 %v3233_v6, %v3842_v33  ;;  %v3125_v59 = vld [vmem:[#allocation10 + $0x10] sm:$0xff]  }
 0x576   : > { %2890 = vmatpush3.bf16.msra.mxu1 %v985_v49  ;;  %2891 = vmatprep.mubr.msk.bf16.mxu1 %vm3495_vm0, %v3494_v1 }
 0x577   : > { %2901 = vmatprep.subr.bf16.mxu1 %v3494_v1  ;;  %v1216_v11 = vpack.c.bf16 %v1215_v8, %v1215_v8  ;;  %2964 = vmatpush3.bf16.msra.mxu0 %v3124_v57  ;;  %v3163_v57 = vld [vmem:[#allocation12 + $0x4c] ss:$16 sps:$4 sm:$0xff]  }
 0x578   : > { %2965 = vmatprep.subr.bf16.mxu0 %v3494_v1 }
 0x57a   : > { %v3235_v12 = vpop.eup %3234 }
 0x57b   : > { %v1334_v14 = vmul.f32 %v3235_v12, %v3846_v35  ;;  %2966 = vmatpush3.bf16.msra.mxu0 %v3125_v59  ;;  %v3161_v59 = vld [vmem:[#allocation12 + $0x48] ss:$16 sps:$4 sm:$0xff]  }
 0x57c   : > { %2967 = vmatprep.subr.bf16.mxu0 %v3494_v1 }
 0x57d   : > { %2892 = vmatmul.mubr.msk.bf16.vlgmr.msra.gmra.mxu1 %vm732_vm3, %v978_v63  ;;  %v1335_v18 = vpack.c.bf16 %v1334_v14, %v1334_v14  ;;  %v3126_v63 = vld [vmem:[#allocation10 + $0x8] sm:$0xff]  }
 0x57e   : > { %2902 = vmatpush3.bf16.msra.mxu1 %v1104_v3  ;;  %2903 = vmatprep.mubr.msk.bf16.mxu1 %vm3495_vm0, %v3494_v1  ;;  %v3127_v3 = vld [vmem:[#allocation10] sm:$0xff]  }
 0x57f   : > { %2913 = vmatprep.subr.bf16.mxu1 %v3494_v1  ;;  %2968 = vmatpush3.bf16.msra.mxu0 %v3126_v63  ;;  %v3172_v63 = vld [vmem:[#allocation12 + $0x4] ss:$16 sps:$4 sm:$0xff]  }
 0x580   : > { %2969 = vmatprep.subr.bf16.mxu0 %v3494_v1 }
 0x583   : > { %2970 = vmatpush3.bf16.msra.mxu0 %v3127_v3  ;;  %v3170_v3 = vld [vmem:[#allocation12] ss:$16 sps:$4 sm:$0xff]  }
 0x585   : > { %2904 = vmatmul.mubr.msk.bf16.vlgmr.msra.gmra.mxu1 %vm732_vm3, %v1097_v5 }
 0x586   : > { %2915 = vmatprep.mubr.msk.bf16.mxu1 %vm3495_vm0, %v3494_v1 }
 0x597   : > { %v1451_v7 = vpop.xlane.xlu1 %1450 }
 0x598   : > { %3236 = vrcp.f32 %v1451_v7 }
 0x59b   : > { %v1218_v9 = vpop.permute.xlu1 %1217 }
 0x59c   : > { %v1223_v10 = vsel %vm748_vm2, %v1218_v9, 0 }
 0x59d   : > { %2914 = vmatpush3.bf16.msra.mxu1 %v1223_v10 }
 0x59e   : > { %2925 = vmatprep.subr.bf16.mxu1 %v3494_v1 }
 0x59f   : > { %v1456_v17 = vpop.permute.xlu1 %1455 }
 0x5a0   : > { %2916 = vmatmul.mubr.msk.bf16.vlgmr.msra.gmra.mxu1 %vm732_vm3, %v1216_v11  ;;  %v1461_v20 = vsel %vm748_vm2, %v1456_v17, 0 }
 0x5a1   : > { %2927 = vmatprep.mubr.msk.bf16.mxu1 %vm3495_vm0, %v3494_v1 }
 0x5a3   : > { %v1575_v22 = vpop.permute.xlu1 %1574 }
 0x5a4   : > { %v1580_v25 = vsel %vm748_vm2, %v1575_v22, 0 }
 0x5a5   : > { %v1570_v13 = vpop.xlane.xlu0 %1569  ;;  %v3237_v19 = vpop.eup %3236 }
 0x5a6   : > { %3238 = vrcp.f32 %v1570_v13  ;;  %v1453_v21 = vmul.f32 %v3237_v19, %v3856_v43 }
 0x5a8   : > { %v1454_v23 = vpack.c.bf16 %v1453_v21, %v1453_v21 }
 0x5a9   : > { %v1337_v15 = vpop.permute.xlu0 %1336 }
 0x5aa   : > { %v1342_v16 = vsel %vm748_vm2, %v1337_v15, 0 }
 0x5ab   : > { %2926 = vmatpush3.bf16.msra.mxu1 %v1342_v16 }
 0x5ac   : > { %2937 = vmatprep.subr.bf16.mxu1 %v3494_v1 }
 0x5ae   : > { %2928 = vmatmul.mubr.msk.bf16.vlgmr.msra.gmra.mxu1 %vm732_vm3, %v1335_v18 }
 0x5af   : > { %2938 = vmatpush3.bf16.msra.mxu1 %v1461_v20  ;;  %2939 = vmatprep.mubr.msk.bf16.mxu1 %vm3495_vm0, %v3494_v1  ;;  %v2651_v20 = vld [vmem:[%s4002_s5] ss:$0 sm:$0xff] }
 0x5b0   : > { %2949 = vmatprep.subr.bf16.mxu1 %v3494_v1 }
 0x5b3   : > { %v3239_v24 = vpop.eup %3238 }
 0x5b4   : > { %v1572_v26 = vmul.f32 %v3239_v24, %v3860_v46  ;;  %v3244_v24 = vld [vmem:[%s3715_s4] sm:$0xff]  ;;  %s2455_s4 = scalar_lea.sflag [#allocation6], %s3709_s2 }
 0x5b6   : > { %2940 = vmatmul.mubr.msk.bf16.vlgmr.msra.gmra.mxu1 %vm732_vm3, %v1454_v23  ;;  %v1573_v27 = vpack.c.bf16 %v1572_v26, %v1572_v26 }
 0x5b7   : > { %2950 = vmatpush3.bf16.msra.mxu1 %v1580_v25  ;;  %2951 = vmatprep.mubr.msk.bf16.mxu1 %vm3495_vm0, %v3494_v1 }
 0x5be   : > { %2952 = vmatmul.mubr.msk.bf16.vlgmr.msra.gmra.mxu1 %vm732_vm3, %v1573_v27 }
 0x5bf   : > { %2021 = vmatprep.mubr.bf16.mxu1 %v3493_v0 }
 0x635   : > { %v902_v28 = vpop.f32.mrf.mxu1 }
 0x636   : > { %v2738_v32 = vpack.c.bf16 %v902_v28, %v902_v28  ;;  %v3128_v28 = vld [vmem:[#allocation12 + $0xe0] ss:$16 sps:$4 sm:$0xff]  }
 0x637   : > { %v2881_v33 = vpop.f32.mrf.mxu1 }
 0x638   : > { %912 = vrot.lane.b32.xlu1 %v2738_v32, %s3502_s20  ;;  %v3130_v32 = vld [vmem:[#allocation12 + $0xe4] ss:$16 sps:$4 sm:$0xff]   ;;  %v3131_v33 = vld [vmem:[#allocation12 + $0xe8] ss:$16 sps:$4 sm:$0xff]  }
 0x639   : > { %v905_v34 = vpop.f32.mrf.mxu1  ;;  %1989 = vmatprep.subr.bf16.mxu1 %v3130_v32  ;;  %v3191_v32 = vld [vmem:[#allocation13 + $0xa0] sm:$0xff]  }
 0x63a   : > { %v3133_v34 = vld [vmem:[#allocation12 + $0xec] ss:$16 sps:$4 sm:$0xff]   ;;  %1990 = vmatpush1.bf16.msra.mxu1 %v3128_v28  ;;  %v3190_v28 = vld [vmem:[#allocation13 + $0x20] sm:$0xff]  }
 0x63b   : > { %v2882_v35 = vpop.f32.mrf.mxu1  ;;  %2030 = vmatprep.subr.bf16.mxu0 %v3133_v34  ;;  %v3193_v34 = vld [vmem:[#allocation13 + $0xd8] sm:$0xff]  }
 0x63c   : > { %v3136_v35 = vld [vmem:[#allocation12 + $0xc4] ss:$16 sps:$4 sm:$0xff]  }
 0x63d   : > { %v1021_v36 = vpop.f32.mrf.mxu1  ;;  %1991 = vmatprep.subr.bf16.mxu1 %v3136_v35  ;;  %v3194_v35 = vld [vmem:[#allocation13 + $0x18] sm:$0xff]  }
 0x63e   : > { %v2739_v37 = vpack.c.bf16 %v1021_v36, %v1021_v36  ;;  %v3139_v36 = vld [vmem:[#allocation12 + $0xcc] ss:$16 sps:$4 sm:$0xff]  }
 0x63f   : > { %v2893_v38 = vpop.f32.mrf.mxu1 }
 0x640   : > { %1031 = vrot.lane.b32.xlu1 %v2739_v37, %s3501_s17  ;;  %v3137_v37 = vld [vmem:[#allocation12 + $0xc8] ss:$16 sps:$4 sm:$0xff]  }
 0x641   : > { %v1024_v39 = vpop.f32.mrf.mxu1 }
 0x643   : > { %v2894_v40 = vpop.f32.mrf.mxu1 }
 0x645   : > { %v1140_v41 = vpop.f32.mrf.mxu1 }
 0x646   : > { %v2740_v42 = vpack.c.bf16 %v1140_v41, %v1140_v41 }
 0x647   : > { %v2905_v43 = vpop.f32.mrf.mxu1 }
 0x648   : > { %1150 = vrot.lane.b32.xlu0 %v2740_v42, %s3500_s18  ;;  %v3142_v42 = vld [vmem:[#allocation12 + $0xa4] ss:$16 sps:$4 sm:$0xff]   ;;  %v3145_v43 = vld [vmem:[#allocation12 + $0xac] ss:$16 sps:$4 sm:$0xff]  }
 0x649   : > { %v1143_v45 = vpop.f32.mrf.mxu1 }
 0x64a   : > { %v3140_v45 = vld [vmem:[#allocation12 + $0xa0] ss:$16 sps:$4 sm:$0xff]  }
 0x64b   : > { %v2906_v46 = vpop.f32.mrf.mxu1 }
 0x64c   : > { %v3143_v46 = vld [vmem:[#allocation12 + $0xa8] ss:$16 sps:$4 sm:$0xff]  }
 0x660   : > { %v1259_v50 = vpop.f32.mrf.mxu1 }
 0x661   : > { %v2741_v51 = vpack.c.bf16 %v1259_v50, %v1259_v50  ;;  %v3149_v50 = vld [vmem:[#allocation12 + $0x88] ss:$16 sps:$4 sm:$0xff]  }
 0x662   : > { %v2917_v52 = vpop.f32.mrf.mxu1 }
 0x663   : > { %1269 = vrot.lane.b32.xlu1 %v2741_v51, %s3499_s23  ;;  %v3151_v51 = vld [vmem:[#allocation12 + $0x8c] ss:$16 sps:$4 sm:$0xff]   ;;  %v3154_v52 = vld [vmem:[#allocation12 + $0x64] ss:$16 sps:$4 sm:$0xff]  }
 0x664   : > { %v1262_v53 = vpop.f32.mrf.mxu1 }
 0x665   : > { %v3157_v53 = vld [vmem:[#allocation12 + $0x6c] ss:$16 sps:$4 sm:$0xff]  }
 0x666   : > { %v2918_v55 = vpop.f32.mrf.mxu1 }
 0x667   : > { %v3155_v55 = vld [vmem:[#allocation12 + $0x68] ss:$16 sps:$4 sm:$0xff]  }
 0x66e   : > { %v1378_v58 = vpop.f32.mrf.mxu1 }
 0x66f   : > { %v2742_v60 = vpack.c.bf16 %v1378_v58, %v1378_v58  ;;  %v3158_v58 = vld [vmem:[#allocation12 + $0x40] ss:$16 sps:$4 sm:$0xff]  }
 0x670   : > { %v2929_v49 = vpop.f32.mrf.mxu1 }
 0x671   : > { %1388 = vrot.lane.b32.xlu0 %v2742_v60, %s3498_s19  ;;  %v3166_v60 = vld [vmem:[#allocation12 + $0x24] ss:$16 sps:$4 sm:$0xff]   ;;  %v3169_v49 = vld [vmem:[#allocation12 + $0x2c] ss:$16 sps:$4 sm:$0xff]  }
 0x672   : > { %v1381_v61 = vpop.f32.mrf.mxu1 }
 0x673   : > { %v3164_v61 = vld [vmem:[#allocation12 + $0x20] ss:$16 sps:$4 sm:$0xff]  }
 0x674   : > { %v2930_v62 = vpop.f32.mrf.mxu1 }
 0x675   : > { %v3167_v62 = vld [vmem:[#allocation12 + $0x28] ss:$16 sps:$4 sm:$0xff]  }
 0x676   : > { %v1497_v2 = vpop.f32.mrf.mxu1 }
 0x677   : > { %v2743_v4 = vpack.c.bf16 %v1497_v2, %v1497_v2  ;;  %v3175_v2 = vld [vmem:[#allocation12 + $0xc] ss:$16 sps:$4 sm:$0xff]  }
 0x678   : > { %v2941_v5 = vpop.f32.mrf.mxu1 }
 0x679   : > { %1507 = vrot.lane.b32.xlu1 %v2743_v4, %s3497_s25  ;;  %v3173_v4 = vld [vmem:[#allocation12 + $0x8] ss:$16 sps:$4 sm:$0xff]   ;;  %s3503_s25 = smov [#allocation15]  }
 0x67a   : > { %v1500_v6 = vpop.f32.mrf.mxu1  ;;  %v3176_v5 = vld [vmem:[#allocation13 + $0x78] sm:$0xff]   ;;  %s3407_s19 = sshll.u32 %s3503_s25, 4  ;;  %s3408_s19 = int_to_ptr.vmem [resolvable:$false] %s3407_s19 }
 0x67b   : > { %v3177_v6 = vld [vmem:[#allocation13 + $0xf8] sm:$0xff]   ;;  %s3409_s14 = scalar_lea.vmem %s3408_s19, 256  ;;  %p3410_p7 = scmp.lt.s32.totalorder %s2469_s12, %s3408_s19 }
 0x67c   : > { %v2942_v7 = vpop.f32.mrf.mxu1 }
 0x67e   : > { %v1616_v8 = vpop.f32.mrf.mxu1 }
 0x67f   : > { %v2744_v9 = vpack.c.bf16 %v1616_v8, %v1616_v8 }
 0x680   : > { %v2953_v10 = vpop.f32.mrf.mxu1 }
 0x681   : > { %1626 = vrot.lane.b32.xlu0 %v2744_v9, %s3496_s15  ;;  %s3403_s15 = scalar_lea.vmem %s2469_s12, 128 }
 0x682   : > { %v1619_v11 = vpop.f32.mrf.mxu1  ;;  %p3404_p8 = scmp.ne.s32.totalorder %s2469_s12, %s3403_s15  ;;  %p3411_p5 = scmp.lt.s32.totalorder %s3409_s14, %s3403_s15 }
 0x683   : > { %v2662_v11 = vld [vmem:[%s4002_s5 + $0x1] ss:$0 sm:$0xff] }
 0x684   : > { %v2954_v12 = vpop.f32.mrf.mxu1  ;;  %p3405_p4 = pnand %p3404_p8, %p4032_p9  ;;  %p3412_p2 = por %p3411_p5, %p3410_p7 }
 0x686   : > { %p3406_p11 = pneg %p3405_p4 }
 0x688   : > { %p3413_p1 = pnand %p3412_p2, %p3406_p11 }
 0x6aa   : > { %v913_v13 = vpop.permute.xlu1 %912 }
 0x6ab   : > { %916 = vst.msk [vmem:[#allocation2] sm:$0xf] %vm915_vm5, %v913_v13  ;;  %v2663_v13 = vld [vmem:[%s4002_s5 + $0x2] ss:$0 sm:$0xff] }
 0x6b2   : > { %v1032_v14 = vpop.permute.xlu1 %1031 }
 0x6b3   : > { %1035 = vst.msk [vmem:[#allocation2] sm:$0xf] %vm1034_vm6, %v1032_v14 }
 0x6ba   : > { %v1151_v1 = vpop.permute.xlu0 %1150 }
 0x6bb   : > { %1154 = vst.msk [vmem:[#allocation2] sm:$0xf] %vm1153_vm7, %v1151_v1 }
 0x6d5   : > { %v1270_v15 = vpop.permute.xlu1 %1269 }
 0x6d6   : > { %1273 = vst.msk [vmem:[#allocation2] sm:$0xf] %vm1272_vm8, %v1270_v15  ;;  %v3178_v15 = vld [vmem:[#allocation13 + $0x38] sm:$0xff]  }
 0x6e3   : > { %v1389_v16 = vpop.permute.xlu0 %1388 }
 0x6e4   : > { %1392 = vst.msk [vmem:[#allocation2] sm:$0xf] %vm1391_vm9, %v1389_v16  ;;  %v3179_v16 = vld [vmem:[#allocation13 + $0xb8] sm:$0xff]  }
 0x6eb   : > { %v1508_v17 = vpop.permute.xlu1 %1507 }
 0x6ec   : > { %1511 = vst.msk [vmem:[#allocation2] sm:$0xf] %vm1510_vm10, %v1508_v17 }
 0x6f3   : > { %v1627_v18 = vpop.permute.xlu0 %1626 }
 0x6f4   : > { %1630 = vst.msk [vmem:[#allocation2] sm:$0xf] %vm1629_vm11, %v1627_v18  ;;  %v3180_v18 = vld [vmem:[#allocation13 + $0x70] sm:$0xff]  }
 0x6fb   : > { %v1631_v19 = vld [vmem:[#allocation2] sm:$0xf] }
 0x6fc   : > { %2972 = vmatmul.mubr.bf16.vlgmr.msra.gmra.mxu0 %v1631_v19  ;;  %v3181_v19 = vld [vmem:[#allocation13 + $0xf0] sm:$0xff]  }
 0x6fd   : > { %2062 = vmatprep.mubr.bf16.mxu0 %v3493_v0  ;;  %v3134_v0 = vld [vmem:[#allocation12 + $0xc0] ss:$16 sps:$4 sm:$0xff]   ;;  %2031 = vmatpush1.bf16.msra.mxu0 %v3131_v33  ;;  %v3192_v33 = vld [vmem:[#allocation13 + $0x58] sm:$0xff]  }
 0x6fe   : > { %2032 = vmatprep.subr.bf16.mxu0 %v3139_v36  ;;  %1992 = vmatpush1.bf16.msra.mxu1 %v3134_v0  ;;  %v3195_v36 = vld [vmem:[#allocation13 + $0x98] sm:$0xff]   ;;  %v3196_v0 = vld [vmem:[#allocation13 + $0x50] sm:$0xff]  }
 0x6ff   : > { %1993 = vmatprep.subr.bf16.mxu1 %v3142_v42  ;;  %v3202_v42 = vld [vmem:[#allocation13 + $0x8] sm:$0xff]  }
 0x701   : > { %2033 = vmatpush1.bf16.msra.mxu0 %v3137_v37  ;;  %v3197_v37 = vld [vmem:[#allocation13 + $0xd0] sm:$0xff]  }
 0x702   : > { %2034 = vmatprep.subr.bf16.mxu0 %v3145_v43  ;;  %1994 = vmatpush1.bf16.msra.mxu1 %v3140_v45  ;;  %v3203_v43 = vld [vmem:[#allocation13 + $0x88] sm:$0xff]   ;;  %v3204_v45 = vld [vmem:[#allocation13 + $0x40] sm:$0xff]  }
 0x703   : > { %1995 = vmatprep.subr.bf16.mxu1 %v3148_v48  ;;  %v3207_v48 = vld [vmem:[#allocation13 + $0x80] sm:$0xff]  }
 0x705   : > { %2035 = vmatpush1.bf16.msra.mxu0 %v3143_v46  ;;  %v3205_v46 = vld [vmem:[#allocation13 + $0xc0] sm:$0xff]  }
 0x706   : > { %2036 = vmatprep.subr.bf16.mxu0 %v3151_v51  ;;  %1996 = vmatpush1.bf16.msra.mxu1 %v3146_v47  ;;  %v3206_v47 = vld [vmem:[#allocation13] sm:$0xff]   ;;  %v1823_v51 = vsub.s32 3, %v3751_v29 }
 0x707   : > { %1997 = vmatprep.subr.bf16.mxu1 %v3154_v52 }
 0x709   : > { %2037 = vmatpush1.bf16.msra.mxu0 %v3149_v50  ;;  %v1807_v50 = vld [vmem:[%s4004_s7] sm:$0xf] }
 0x70a   : > { %2038 = vmatprep.subr.bf16.mxu0 %v3157_v53  ;;  %1998 = vmatpush1.bf16.msra.mxu1 %v3152_v54  ;;  %v1812_v52 = vrot.slane %v1807_v50, %v460_v31  ;;  %v1820_v53 = vrot.slane %v1807_v50, %v468_v44  ;;  %v1816_v54 = vrot.slane %v1807_v50, %v464_v30 }
 0x70b   : > { %1999 = vmatprep.subr.bf16.mxu1 %v3160_v56 }
 0x70d   : > { %2039 = vmatpush1.bf16.msra.mxu0 %v3155_v55  ;;  %v1824_v55 = vrot.slane %v1807_v50, %v1823_v51 }
 0x70e   : > { %2040 = vmatprep.subr.bf16.mxu0 %v3163_v57  ;;  %2000 = vmatpush1.bf16.msra.mxu1 %v3158_v58 }
 0x70f   : > { %2001 = vmatprep.subr.bf16.mxu1 %v3166_v60 }
 0x711   : > { %2041 = vmatpush1.bf16.msra.mxu0 %v3161_v59 }
 0x712   : > { %2042 = vmatprep.subr.bf16.mxu0 %v3169_v49  ;;  %2002 = vmatpush1.bf16.msra.mxu1 %v3164_v61 }
 0x713   : > { %2003 = vmatprep.subr.bf16.mxu1 %v3172_v63 }
 0x715   : > { %2043 = vmatpush1.bf16.msra.mxu0 %v3167_v62 }
 0x716   : > { %2044 = vmatprep.subr.bf16.mxu0 %v3175_v2  ;;  %2004 = vmatpush1.bf16.msra.mxu1 %v3170_v3 }
 0x717   : > { %2795 = vmatprep.subr.bf16.mxu1 %v3176_v5 }
 0x719   : > { %2045 = vmatpush1.bf16.msra.mxu0 %v3173_v4 }
 0x71a   : > { %2817 = vmatprep.subr.bf16.mxu0 %v3177_v6 }
 0x7bc   : > { %v1737_v21 = vpop.f32.mrf.mxu0 }
 0x7bd   : > { %v1738_v22 = vadd.f32 %v2651_v20, %v1737_v21  ;;  %v3182_v20 = vld [vmem:[#allocation13 + $0x30] sm:$0xff]  }
 0x7be   : > { %v2973_v23 = vpop.f32.mrf.mxu0  ;;  %v3183_v21 = vld [vmem:[#allocation13 + $0xb0] sm:$0xff]  }
 0x7bf   : > { %v1743_v25 = vadd.f32 %v3244_v24, %v1738_v22  ;;  %v3184_v22 = vld [vmem:[#allocation13 + $0x68] sm:$0xff]  }
 0x7c0   : > { %v1740_v26 = vpop.f32.mrf.mxu0  ;;  %v3185_v23 = vld [vmem:[#allocation13 + $0xe8] sm:$0xff]  }
 0x7c1   : > { %1748 = vadd.xlane.f32.xlu1 %v1743_v25  ;;  %v3186_v24 = vld [vmem:[#allocation13 + $0x28] sm:$0xff]   ;;  %v3188_v26 = vld [vmem:[#allocation13 + $0x60] sm:$0xff]  }
 0x7c2   : > { %v2974_v27 = vpop.f32.mrf.mxu0 }
 0x7c3   : > { %v3189_v27 = vld [vmem:[#allocation13 + $0xe0] sm:$0xff]  }
 0x84a   : > { %v1749_v38 = vpop.xlane.xlu1 %1748 }
 0x84b   : > { %v1751_v39 = vmul.f32 0.0078125, %v1749_v38  ;;  %v3198_v38 = vld [vmem:[#allocation13 + $0x10] sm:$0xff]  }
 0x84d   : > { %v1752_v40 = vsub.f32 %v1743_v25, %v1751_v39  ;;  %v3187_v25 = vld [vmem:[#allocation13 + $0xa8] sm:$0xff]   ;;  %v3199_v39 = vld [vmem:[#allocation13 + $0x90] sm:$0xff]  }
 0x84f   : > { %v1753_v41 = vmul.f32 %v1752_v40, %v1752_v40 }
 0x851   : > { %1754 = vadd.xlane.f32.xlu0 %v1753_v41  ;;  %v3201_v41 = vld [vmem:[#allocation13 + $0xc8] sm:$0xff]  }
 0x8da   : > { %v1755_v7 = vpop.xlane.xlu0 %1754 }
 0x8db   : > { %v1756_v8 = vmul.f32 0.0078125, %v1755_v7 }
 0x8dd   : > { %v1757_v9 = vadd.f32 1e-05, %v1756_v8 }
 0x8df   : > { %3240 = vrsqrt.f32 %v1757_v9 }
 0x8ec   : > { %v3241_v10 = vpop.eup %3240 }
 0x8ed   : > { %v1759_v12 = vmul.f32 %v3241_v10, %v1752_v40  ;;  %v3200_v40 = vld [vmem:[#allocation13 + $0x48] sm:$0xff]  }
 0x8ef   : > { %v1766_v14 = vmul.f32 %v2662_v11, %v1759_v12  ;;  %v2697_v11 = vld [vmem:[%s4002_s5 + $0x3] ss:$0 sm:$0xff] }
 0x8f1   : > { %v3936_v1 = vadd.f32 %v2663_v13, %v1766_v14 }
 0x8f3   : > { %v1774_v17 = vpack.c.bf16 %v3936_v1, %v3936_v1 }
 0x8f5   : > { %2022 = vmatmul.mubr.bf16.vlgmr.msra.gmra.mxu1 %v1774_v17  ;;  %2063 = vmatmul.mubr.bf16.vlgmr.msra.gmra.mxu0 %v1774_v17 }
 0x8f6   : > { %2796 = vmatpush3.bf16.msra.mxu1 %v3178_v15  ;;  %2818 = vmatpush3.bf16.msra.mxu0 %v3179_v16 }
 0x8f7   : > { %2797 = vmatprep.subr.bf16.mxu1 %v3180_v18  ;;  %2819 = vmatprep.subr.bf16.mxu0 %v3181_v19 }
 0x8fa   : > { %2798 = vmatpush3.bf16.msra.mxu1 %v3182_v20  ;;  %2820 = vmatpush3.bf16.msra.mxu0 %v3183_v21 }
 0x8fb   : > { %2799 = vmatprep.subr.bf16.mxu1 %v3184_v22  ;;  %2821 = vmatprep.subr.bf16.mxu0 %v3185_v23 }
 0x8fe   : > { %2800 = vmatpush3.bf16.msra.mxu1 %v3186_v24  ;;  %2822 = vmatpush3.bf16.msra.mxu0 %v3187_v25 }
 0x8ff   : > { %2801 = vmatprep.subr.bf16.mxu1 %v3188_v26  ;;  %2823 = vmatprep.subr.bf16.mxu0 %v3189_v27 }
 0x902   : > { %2802 = vmatpush3.bf16.msra.mxu1 %v3190_v28  ;;  %2824 = vmatpush3.bf16.msra.mxu0 %v3191_v32 }
 0x903   : > { %2803 = vmatprep.subr.bf16.mxu1 %v3192_v33  ;;  %2825 = vmatprep.subr.bf16.mxu0 %v3193_v34  ;;  %v2732_v34 = vld [vmem:[%s4002_s5 + $0x4] ss:$0 sm:$0xff] }
 0x906   : > { %2804 = vmatpush3.bf16.msra.mxu1 %v3194_v35  ;;  %2826 = vmatpush3.bf16.msra.mxu0 %v3195_v36 }
 0x907   : > { %2805 = vmatprep.subr.bf16.mxu1 %v3196_v0  ;;  %2827 = vmatprep.subr.bf16.mxu0 %v3197_v37 }
 0x90a   : > { %2806 = vmatpush3.bf16.msra.mxu1 %v3198_v38  ;;  %2828 = vmatpush3.bf16.msra.mxu0 %v3199_v39 }
 0x90b   : > { %2807 = vmatprep.subr.bf16.mxu1 %v3200_v40  ;;  %2829 = vmatprep.subr.bf16.mxu0 %v3201_v41 }
 0x90e   : > { %2808 = vmatpush3.bf16.msra.mxu1 %v3202_v42  ;;  %2830 = vmatpush3.bf16.msra.mxu0 %v3203_v43 }
 0x90f   : > { %2809 = vmatprep.subr.bf16.mxu1 %v3204_v45  ;;  %2831 = vmatprep.subr.bf16.mxu0 %v3205_v46 }
 0x912   : > { %2810 = vmatpush3.bf16.msra.mxu1 %v3206_v47  ;;  %2832 = vmatpush3.bf16.msra.mxu0 %v3207_v48 }
 0x9b5   : > { %v2023_v56 = vpop.f32.mrf.mxu1  ;;  %v2064_v57 = vpop.f32.mrf.mxu0 }
 0x9b6   : > { %v2024_v58 = vadd.f32 %v2023_v56, %v1812_v52  ;;  %v2065_v59 = vadd.f32 %v2064_v57, %v1820_v53 }
 0x9b7   : > { %v2025_v60 = vpop.f32.mrf.mxu1  ;;  %v2066_v49 = vpop.f32.mrf.mxu0 }
 0x9b8   : > { %v2026_v61 = vadd.f32 %v2025_v60, %v1816_v54  ;;  %v2067_v62 = vadd.f32 %v2066_v49, %v1824_v55  ;;  %v2071_v63 = vmax.f32 %v2024_v58, 0.0  ;;  %v2073_v2 = vmax.f32 %v2065_v59, 0.0 }
 0x9b9   : > { %v2027_v3 = vpop.f32.mrf.mxu1  ;;  %v2068_v4 = vpop.f32.mrf.mxu0 }
 0x9ba   : > { %v2072_v31 = vmax.f32 %v2026_v61, 0.0  ;;  %v2074_v5 = vmax.f32 %v2067_v62, 0.0  ;;  %v2075_v30 = vpack.c.bf16 %v2071_v63, %v2071_v63  ;;  %v2077_v8 = vpack.c.bf16 %v2073_v2, %v2073_v2 }
 0x9bb   : > { %v2028_v6 = vpop.f32.mrf.mxu1  ;;  %v2069_v44 = vpop.f32.mrf.mxu0 }
 0x9bc   : > { %v2076_v7 = vpack.c.bf16 %v2072_v31, %v2072_v31  ;;  %v2078_v29 = vpack.c.bf16 %v2074_v5, %v2074_v5 }
 0x9be   : > { %2375 = vmatprep.mubr.bf16.mxu1 %v2076_v7  ;;  %2415 = vmatprep.mubr.bf16.mxu0 %v2078_v29 }
 0x9bf   : > { %2376 = vmatmul.mubr.bf16.vlgmr.msra.gmra.mxu1 %v2075_v30  ;;  %2416 = vmatmul.mubr.bf16.vlgmr.msra.gmra.mxu0 %v2077_v8 }
 0xa7f   : > { %v2811_v9 = vpop.f32.mrf.mxu1  ;;  %v2833_v10 = vpop.f32.mrf.mxu0 }
 0xa81   : > { %v2812_v12 = vpop.f32.mrf.mxu1  ;;  %v2834_v13 = vpop.f32.mrf.mxu0 }
 0xa82   : > { %v2813_v14 = vadd.f32 %v2812_v12, %v2811_v9  ;;  %v2835_v18 = vadd.f32 %v2834_v13, %v2833_v10 }
 0xa83   : > { %v2814_v15 = vpop.f32.mrf.mxu1  ;;  %v2836_v16 = vpop.f32.mrf.mxu0 }
 0xa84   : > { %v2378_v17 = vadd.f32 %v2813_v14, %v2697_v11 }
 0xa85   : > { %v2815_v19 = vpop.f32.mrf.mxu1  ;;  %v2837_v20 = vpop.f32.mrf.mxu0 }
 0xa86   : > { %v2418_v21 = vadd.f32 %v2835_v18, %v2378_v17 }
 0xa88   : > { %v2423_v22 = vadd.f32 %v2418_v21, %v3936_v1  ;;  %v2733_v1 = vld [vmem:[%s4002_s5 + $0x5] ss:$0 sm:$0xff] }
 0xa8a   : > { %2428 = vadd.xlane.f32.xlu0 %v2423_v22 }
 0xb13   : > { %v2429_v23 = vpop.xlane.xlu0 %2428 }
 0xb14   : > { %v2430_v24 = vmul.f32 0.0078125, %v2429_v23 }
 0xb16   : > { %v2431_v25 = vsub.f32 %v2423_v22, %v2430_v24 }
 0xb18   : > { %v2432_v26 = vmul.f32 %v2431_v25, %v2431_v25 }
 0xb1a   : > { %2433 = vadd.xlane.f32.xlu1 %v2432_v26 }
 0xba3   : > { %v2434_v27 = vpop.xlane.xlu1 %2433 }
 0xba4   : > { %v2435_v28 = vmul.f32 0.0078125, %v2434_v27 }
 0xba6   : > { %v2436_v32 = vadd.f32 1e-05, %v2435_v28 }
 0xba8   : > { %3242 = vrsqrt.f32 %v2436_v32 }
 0xbb5   : > { %v3243_v33 = vpop.eup %3242 }
 0xbb6   : > { %v2438_v35 = vmul.f32 %v3243_v33, %v2431_v25 }
 0xbb8   : > { %v2445_v36 = vmul.f32 %v2732_v34, %v2438_v35 }
 0xbba   : > { %v2452_v0 = vadd.f32 %v2733_v1, %v2445_v36 }
 0xbbc   : > { %2453 = vst [vmem:[%s420_s16] sm:$0xff] %v2452_v0 }
 0xbbd   : > { %3416 = shalt.err (!%p3413_p1)
}
 0xbbe   : > { %s3417_s24 = scalar_lea.hbm %s2466_s3, 128  ;;  %s3421_s18 = scalar_lea.hbm %s4006_s9, 256 }
 0xbbf   : > { %p3418_p3 = scmp.ne.s32.totalorder %s2466_s3, %s3417_s24  ;;  %p3422_p12 = scmp.lt.s32.totalorder %s2466_s3, %s4006_s9 }
 0xbc0   : > { %p3423_p13 = scmp.lt.s32.totalorder %s3421_s18, %s3417_s24 }
 0xbc1   : > { %p3419_p10 = pnand %p3418_p3, %p4032_p9 }
 0xbc2   : > { %p3424_p0 = por %p3423_p13, %p3422_p12 }
 0xbc3   : > { %p3420_p6 = pneg %p3419_p10 }
 0xbc5   : > { %p3425_p8 = pnand %p3424_p0, %p3420_p6 }
 0xbc7   : > { %3428 = shalt.err (!%p3425_p8)
}
 0xbc8   : > { %2997 = dma.vmem_to_hbm [thread:$0]  (%p4032_p9), %s2469_s12, 128, %s2466_s3, %s2455_s4  }
 0xbc9 PF: > { %s2480_s13 = sand.u32 1, %s3467_s29   ;;  %p4033_p4 = scmp.ne.s32.totalorder %s4022_s26, 0 }
 0xbca   : > { %p4034_p11 = scmp.ge.s32.totalorder %s3479_s11, 2  ;;  %s2481_s16 = scalar_lea.sflag [#allocation6], %s2480_s13 }
 0xbcc   : > { %p3020_p7 = pnand %p4034_p11, %p4033_p4 }
 0xbce   : > { %p3021_p5 = pneg %p3020_p7 }
 0xbd0   : > { %3462 = dma.done.wait (%p3021_p5), %s2481_s16, 128  }
 0xbd1   : > { %3464 = vsyncadd (%p3021_p5), %s2481_s16, 4294967168  ;;  %p27_p2 = scmp.ge.s32.totalorder %s3652_s21, 4   ;;  %s4035_s29 = smov %s3471_s30 }
 0xbd2   : > { %s4036_s30 = smov %s3475_s10  ;;  %s4037_s10 = smov %s3664_s0 }
 0xbd3   : > { %s4038_s11 = smov %s3652_s21  ;;  %29 = sbr.rel (!%p27_p2) target bundleno = 12 (0xc), region = 126 }
 0xbd8   :  { %2486 = vsyncpa [#allocation5], 1 }
 0xbd9   :  { %2488 = vsyncpa [#allocation5 + $0x1], 1 }
 0xbda   :  { %2489 = vsyncpa [#allocation8], 1 }
 0xbdb   :  { %2490 = vsyncpa [#allocation11], 1 }
 0xbdc   :  { %2491 = vsyncpa [#allocation14], 1 }
 0xbdd   :  { %2492 = vsyncpa [#allocation6], 1 }
 0xbde   :  { %2494 = vsyncpa [#allocation6 + $0x1], 1 }

</bundles_post_ra>
